<compile_context>
chip_gen: v5e
topology: v5e:2x2
jax: 0.10.0
libtpu: 0.0.40
codegen_flags: <defaults>
</compile_context>

<pallas_src>
import math
from functools import partial

import jax
import jax.numpy as jnp
import numpy as np
from jax import lax
from jax.experimental import pallas as pl
from jax.experimental.pallas import tpu as pltpu

LN_EPS = 1e-5


# ---------------------------------------------------------------------------
# Fused Block kernel: (residual add + LayerNorm + Mamba mixer), one batch/grid step
# ---------------------------------------------------------------------------
def _block_kernel(h_ref, r_ref, nw_ref, nb_ref,
                  win_ref, cw_ref, cb_ref, wxp_ref, wdt_ref, dtb_ref,
                  alog_ref, dpar_ref, wout_ref,
                  out_ref, res_ref,
                  pad_s, dt_s, dtu_s, bcol_s, ccol_s, y_s,
                  *, L, dim, d_inner, d_state, dt_rank, d_conv, unroll):
    f32 = jnp.float32
    bf16 = jnp.bfloat16

    # ---------------- Add + LayerNorm (residual kept in f32) ----------------
    res = r_ref[0].astype(f32) + h_ref[0].astype(f32)        # (L, dim)
    res_ref[0] = res                                          # early writeback
    mean = jnp.mean(res, axis=-1, keepdims=True)
    cent = res - mean
    var = jnp.mean(cent * cent, axis=-1, keepdims=True)
    normed = cent * lax.rsqrt(var + LN_EPS) * nw_ref[...] + nb_ref[...]

    # ---------------- in_proj (bias-free), bf16 MXU, f32 accumulate ---------
    xz = jnp.dot(normed.astype(bf16), win_ref[...],
                 preferred_element_type=f32)                  # (L, 2*d_inner)
    xin = xz[:, :d_inner]                                     # (L, d_inner)
    z = xz[:, d_inner:]                                       # (L, d_inner)

    # ------- causal depthwise conv1d via zero-padded scratch (no concat) ----
    pad_s[0:d_conv - 1, :] = jnp.zeros((d_conv - 1, d_inner), f32)
    pad_s[d_conv - 1:d_conv - 1 + L, :] = xin
    acc = jnp.zeros((L, d_inner), f32)
    for k in range(d_conv):                                   # static taps
        acc = acc + pad_s[k:k + L, :] * cw_ref[k:k + 1, :]
    conv = acc + cb_ref[...]
    u = conv * jax.nn.sigmoid(conv)                           # SiLU -> scan input

    # ---------------- input-dependent SSM parameters (x_proj bias-free) -----
    xdb = jnp.dot(u.astype(bf16), wxp_ref[...],
                  preferred_element_type=f32)                 # (L, dt_rank+2*d_state)
    dt_low = xdb[:, :dt_rank]                                 # (L, dt_rank)
    Bmat = xdb[:, dt_rank:dt_rank + d_state]                  # (L, d_state)
    Cmat = xdb[:, dt_rank + d_state:dt_rank + 2 * d_state]    # (L, d_state)

    # dt projection (bf16 MXU, f32 accum) + stable softplus in f32
    dt = jnp.dot(dt_low.astype(bf16), wdt_ref[...],
                 preferred_element_type=f32) + dtb_ref[...]
    dt = jnp.where(dt > 20.0, dt, jnp.log1p(jnp.exp(jnp.minimum(dt, 20.0))))

    a_neg = -jnp.exp(alog_ref[...])                           # (d_state, d_inner)

    # stash per-timestep operands in layouts that broadcast with h directly
    dt_s[...] = dt                                            # (L, d_inner)
    dtu_s[...] = dt * u                                       # (L, d_inner)
    bcol_s[...] = Bmat[:, :, None]                            # (L, d_state, 1)
    ccol_s[...] = Cmat[:, :, None]                            # (L, d_state, 1)

    # ---------------- selective scan: h carried in registers ----------------
    def body(t, h):
        dA_t = jnp.exp(dt_s[pl.ds(t, 1), :] * a_neg)          # (d_state, d_inner)
        h = dA_t * h + dtu_s[pl.ds(t, 1), :] * bcol_s[t]      # (d_state, d_inner)
        y_s[pl.ds(t, 1), :] = jnp.sum(ccol_s[t] * h, axis=0, keepdims=True)
        return h

    lax.fori_loop(0, L, body, jnp.zeros((d_state, d_inner), f32), unroll=unroll)

    # ---------------- D skip, SiLU gate, out_proj (bias-free) ---------------
    y = y_s[...] + u * dpar_ref[...]
    y = y * (z * jax.nn.sigmoid(z))
    out_ref[0] = jnp.dot(y.astype(bf16), wout_ref[...],
                         preferred_element_type=f32).astype(out_ref.dtype)


# ---------------------------------------------------------------------------
# Block.forward equivalent (drop_path = 0, residual_in_fp32 semantics)
# ---------------------------------------------------------------------------
def block_forward(hidden_states, residual, params, *, d_state=16, d_conv=4,
                  expand=2):
    """Returns (mixer_output, residual_out) like Block.forward."""
    B, L, dim = hidden_states.shape
    d_inner = expand * dim
    dt_rank = math.ceil(dim / 16)
    if residual is None:
        residual = jnp.zeros_like(hidden_states)   # residual = hidden_states case

    kern = partial(_block_kernel, L=L, dim=dim, d_inner=d_inner,
                   d_state=d_state, dt_rank=dt_rank, d_conv=d_conv,
                   unroll=min(L, 8))

    seq_spec = pl.BlockSpec((1, L, dim), lambda b: (b, 0, 0))

    def const_spec(a):
        nd = a.ndim
        return pl.BlockSpec(a.shape, lambda b, _nd=nd: (0,) * _nd)

    weights = [params['norm_w'], params['norm_b'], params['win_t'],
               params['conv_w'], params['conv_b'], params['wxp_t'],
               params['wdt_t'], params['dt_bias'], params['a_log_t'],
               params['d_param'], params['wout_t']]

    # --- VMEM budget (scratch + double-buffered seq blocks + weights), with
    #     margin; clamped so it is safe on v5e/v6e/v7x physical VMEM. ---------
    scratch_bytes = 4 * ((L + d_conv - 1) * d_inner + 3 * L * d_inner
                         + 2 * L * d_state)
    block_bytes = 2 * 4 * (L * dim * 4)            # 4 seq blocks, double-buffered
    w_bytes = sum(int(w.size) * w.dtype.itemsize for w in weights)
    vmem_limit = int(min(max(2 * (scratch_bytes + block_bytes + 2 * w_bytes),
                             16 * 1024 * 1024), 56 * 1024 * 1024))

    # --- advisory cost estimate for the XLA scheduler ------------------------
    flops_per_b = (2 * L * dim * (2 * d_inner)                 # in_proj
                   + 2 * L * d_inner * d_conv                  # conv
                   + 2 * L * d_inner * (dt_rank + 2 * d_state) # x_proj
                   + 2 * L * dt_rank * d_inner                 # dt_proj
                   + 7 * L * d_state * d_inner                 # scan mul/add
                   + 2 * L * d_inner * dim                     # out_proj
                   + 12 * L * d_inner + 6 * L * dim)           # LN/SiLU/gate
    trans_per_b = L * d_state * d_inner + 4 * L * d_inner + L
    cost = pl.CostEstimate(
        flops=int(B * flops_per_b),
        transcendentals=int(B * trans_per_b),
        bytes_accessed=int(4 * B * L * dim * 4 + w_bytes))

    grid_spec = pltpu.PrefetchScalarGridSpec(
        num_scalar_prefetch=0,
        grid=(B,),
        in_specs=[seq_spec, seq_spec] + [const_spec(w) for w in weights],
        out_specs=(seq_spec, seq_spec),
        scratch_shapes=[
            pltpu.VMEM((L + d_conv - 1, d_inner), jnp.float32),  # causal conv pad
            pltpu.VMEM((L, d_inner), jnp.float32),               # dt
            pltpu.VMEM((L, d_inner), jnp.float32),               # dt * u
            pltpu.VMEM((L, d_state, 1), jnp.float32),            # B columns
            pltpu.VMEM((L, d_state, 1), jnp.float32),            # C columns
            pltpu.VMEM((L, d_inner), jnp.float32),               # y
        ],
    )
    out, res_out = pl.pallas_call(
        kern,
        grid_spec=grid_spec,
        out_shape=(jax.ShapeDtypeStruct((B, L, dim), jnp.float32),
                   jax.ShapeDtypeStruct((B, L, dim), jnp.float32)),
        compiler_params=pltpu.CompilerParams(
            dimension_semantics=("parallel",),
            vmem_limit_bytes=vmem_limit),
        cost_estimate=cost,
    )(hidden_states, residual, *weights)
    return out, res_out


# ---------------------------------------------------------------------------
# Pure-JAX reference (same mixed-precision choices) for correctness checking
# ---------------------------------------------------------------------------
def block_forward_ref(hidden, residual, params, *, d_state=16, d_conv=4,
                      expand=2):
    f32, bf16 = jnp.float32, jnp.bfloat16
    B, L, dim = hidden.shape
    d_inner = expand * dim
    dt_rank = math.ceil(dim / 16)
    if residual is None:
        residual = jnp.zeros_like(hidden)

    res = residual.astype(f32) + hidden.astype(f32)
    mean = jnp.mean(res, -1, keepdims=True)
    cent = res - mean
    var = jnp.mean(cent * cent, -1, keepdims=True)
    normed = cent * lax.rsqrt(var + LN_EPS) * params['norm_w'] + params['norm_b']

    xz = jnp.dot(normed.astype(bf16), params['win_t'], preferred_element_type=f32)
    xin, z = xz[..., :d_inner], xz[..., d_inner:]

    pad = jnp.pad(xin, ((0, 0), (d_conv - 1, 0), (0, 0)))
    conv = sum(pad[:, k:k + L, :] * params['conv_w'][k] for k in range(d_conv))
    conv = conv + params['conv_b']
    u = conv * jax.nn.sigmoid(conv)

    xdb = jnp.dot(u.astype(bf16), params['wxp_t'], preferred_element_type=f32)
    dt_low = xdb[..., :dt_rank]
    Bm = xdb[..., dt_rank:dt_rank + d_state]
    Cm = xdb[..., dt_rank + d_state:dt_rank + 2 * d_state]

    dt = jnp.dot(dt_low.astype(bf16), params['wdt_t'],
                 preferred_element_type=f32) + params['dt_bias']
    dt = jnp.where(dt > 20.0, dt, jnp.log1p(jnp.exp(jnp.minimum(dt, 20.0))))
    a_neg = -jnp.exp(params['a_log_t'])                        # (d_state, d_inner)

    def scan_one(dt_b, u_b, B_b, C_b):
        def step(h, t):
            dA = jnp.exp(dt_b[t][None, :] * a_neg)
            h = dA * h + (dt_b[t] * u_b[t])[None, :] * B_b[t][:, None]
            y = jnp.sum(C_b[t][:, None] * h, axis=0)
            return h, y
        _, ys = lax.scan(step, jnp.zeros((d_state, d_inner), f32), jnp.arange(L))
        return ys

    ys = jax.vmap(scan_one)(dt, u, Bm, Cm)                     # (B, L, d_inner)
    y = ys + u * params['d_param']
    y = y * (z * jax.nn.sigmoid(z))
    out = jnp.dot(y.astype(bf16), params['wout_t'], preferred_element_type=f32)
    return out, res


# ---------------------------------------------------------------------------
# Deterministic parameter init (shapes follow Mamba(dim, d_state, d_conv, expand))
# Projection weights stored in bf16 (MXU path); everything else f32.
# ---------------------------------------------------------------------------
def init_params(key, dim, *, d_state=16, d_conv=4, expand=2):
    d_inner = expand * dim
    dt_rank = math.ceil(dim / 16)
    ks = jax.random.split(key, 6)
    nrm = lambda k, shape, scale: jax.random.normal(k, shape, jnp.float32) * scale
    a_log_t = jnp.log(jnp.broadcast_to(
        jnp.arange(1, d_state + 1, dtype=jnp.float32)[:, None],
        (d_state, d_inner)))
    return dict(
        norm_w=jnp.ones((1, dim), jnp.float32),
        norm_b=jnp.zeros((1, dim), jnp.float32),
        win_t=nrm(ks[0], (dim, 2 * d_inner), 0.02).astype(jnp.bfloat16),   # in_proj.weight^T
        conv_w=nrm(ks[1], (d_conv, d_inner), 0.2),                         # conv1d.weight^T
        conv_b=nrm(ks[2], (1, d_inner), 0.02),                             # conv1d.bias
        wxp_t=nrm(ks[3], (d_inner, dt_rank + 2 * d_state),
                  0.02).astype(jnp.bfloat16),                              # x_proj.weight^T
        wdt_t=nrm(ks[4], (dt_rank, d_inner), 0.1).astype(jnp.bfloat16),    # dt_proj.weight^T
        dt_bias=jnp.full((1, d_inner), float(jnp.log(jnp.expm1(0.01))),
                         jnp.float32),                                     # dt_proj.bias
        a_log_t=a_log_t,                                                   # A_log^T
        d_param=jnp.ones((1, d_inner), jnp.float32),                       # D
        wout_t=nrm(ks[5], (d_inner, dim), 0.02).astype(jnp.bfloat16),      # out_proj.weight^T
    )


if __name__ == "__main__":
    key = jax.random.PRNGKey(0)
    kx, kr, kp = jax.random.split(key, 3)
    B, L, dim = 2, 8, 32
    hidden = jax.random.normal(kx, (B, L, dim), jnp.float32)
    residual = jax.random.normal(kr, (B, L, dim), jnp.float32)
    params = init_params(kp, dim)

    fwd = jax.jit(partial(block_forward, d_state=16, d_conv=4, expand=2))
    out_hidden, out_residual = fwd(hidden, residual, params)
    jax.block_until_ready((out_hidden, out_residual))

    ref_fwd = jax.jit(partial(block_forward_ref, d_state=16, d_conv=4, expand=2))
    ref_hidden, ref_residual = ref_fwd(hidden, residual, params)
    jax.block_until_ready((ref_hidden, ref_residual))

    assert out_hidden.shape == (B, L, dim)
    assert out_residual.shape == (B, L, dim)
    np.testing.assert_allclose(np.asarray(out_residual), np.asarray(ref_residual),
                               rtol=1e-5, atol=1e-5)
    np.testing.assert_allclose(np.asarray(out_hidden), np.asarray(ref_hidden),
                               rtol=2e-2, atol=2e-2)
    print("KERNEL_OK")
</pallas_src>

<mosaic_0001>
module attributes {stable_mosaic.version = 11 : i64} {
  func.func @_block_kernel(%arg0: i32, %arg1: memref<1x8x32xf32, #tpu.memory_space<vmem>>, %arg2: memref<1x8x32xf32, #tpu.memory_space<vmem>>, %arg3: memref<1x32xf32, #tpu.memory_space<vmem>>, %arg4: memref<1x32xf32, #tpu.memory_space<vmem>>, %arg5: memref<32x128xbf16, #tpu.memory_space<vmem>>, %arg6: memref<4x64xf32, #tpu.memory_space<vmem>>, %arg7: memref<1x64xf32, #tpu.memory_space<vmem>>, %arg8: memref<64x34xbf16, #tpu.memory_space<vmem>>, %arg9: memref<2x64xbf16, #tpu.memory_space<vmem>>, %arg10: memref<1x64xf32, #tpu.memory_space<vmem>>, %arg11: memref<16x64xf32, #tpu.memory_space<vmem>>, %arg12: memref<1x64xf32, #tpu.memory_space<vmem>>, %arg13: memref<64x32xbf16, #tpu.memory_space<vmem>>, %arg14: memref<1x8x32xf32, #tpu.memory_space<vmem>>, %arg15: memref<1x8x32xf32, #tpu.memory_space<vmem>>, %arg16: memref<11x64xf32, #tpu.memory_space<vmem>>, %arg17: memref<8x64xf32, #tpu.memory_space<vmem>>, %arg18: memref<8x64xf32, #tpu.memory_space<vmem>>, %arg19: memref<8x16x1xf32, #tpu.memory_space<vmem>>, %arg20: memref<8x16x1xf32, #tpu.memory_space<vmem>>, %arg21: memref<8x64xf32, #tpu.memory_space<vmem>>) attributes {dimension_semantics = [#tpu.dimension_semantics<parallel>], iteration_bounds = array<i64: 2>, scalar_prefetch = 0 : i64, scratch_operands = 6 : i64, tpu.core_type = #tpu.core_type<tc>, window_params = [{transform_indices = @transform_0, window_bounds = array<i64: 1, 8, 32>}, {transform_indices = @transform_1, window_bounds = array<i64: 1, 8, 32>}, {pipeline_mode = #tpu.pipeline_mode<synchronous>, transform_indices = @transform_2, window_bounds = array<i64: 1, 32>}, {pipeline_mode = #tpu.pipeline_mode<synchronous>, transform_indices = @transform_3, window_bounds = array<i64: 1, 32>}, {pipeline_mode = #tpu.pipeline_mode<synchronous>, transform_indices = @transform_4, window_bounds = array<i64: 32, 128>}, {pipeline_mode = #tpu.pipeline_mode<synchronous>, transform_indices = @transform_5, window_bounds = array<i64: 4, 64>}, {pipeline_mode = #tpu.pipeline_mode<synchronous>, transform_indices = @transform_6, window_bounds = array<i64: 1, 64>}, {pipeline_mode = #tpu.pipeline_mode<synchronous>, transform_indices = @transform_7, window_bounds = array<i64: 64, 34>}, {pipeline_mode = #tpu.pipeline_mode<synchronous>, transform_indices = @transform_8, window_bounds = array<i64: 2, 64>}, {pipeline_mode = #tpu.pipeline_mode<synchronous>, transform_indices = @transform_9, window_bounds = array<i64: 1, 64>}, {pipeline_mode = #tpu.pipeline_mode<synchronous>, transform_indices = @transform_10, window_bounds = array<i64: 16, 64>}, {pipeline_mode = #tpu.pipeline_mode<synchronous>, transform_indices = @transform_11, window_bounds = array<i64: 1, 64>}, {pipeline_mode = #tpu.pipeline_mode<synchronous>, transform_indices = @transform_12, window_bounds = array<i64: 64, 32>}, {transform_indices = @transform_13, window_bounds = array<i64: 1, 8, 32>}, {transform_indices = @transform_14, window_bounds = array<i64: 1, 8, 32>}]} {
    %c0 = arith.constant 0 : index
    %c0_0 = arith.constant 0 : index
    %c0_1 = arith.constant 0 : index
    %0 = vector.load %arg2[%c0, %c0_0, %c0_1] : memref<1x8x32xf32, #tpu.memory_space<vmem>>, vector<1x8x32xf32>
    %1 = vector.shape_cast %0 : vector<1x8x32xf32> to vector<8x32xf32>
    %c0_2 = arith.constant 0 : index
    %c0_3 = arith.constant 0 : index
    %c0_4 = arith.constant 0 : index
    %2 = vector.load %arg1[%c0_2, %c0_3, %c0_4] : memref<1x8x32xf32, #tpu.memory_space<vmem>>, vector<1x8x32xf32>
    %3 = vector.shape_cast %2 : vector<1x8x32xf32> to vector<8x32xf32>
    %4 = arith.addf %1, %3 : vector<8x32xf32>
    %c0_5 = arith.constant 0 : index
    %c0_6 = arith.constant 0 : index
    %c0_7 = arith.constant 0 : index
    %5 = vector.load %arg15[%c0_5, %c0_6, %c0_7] : memref<1x8x32xf32, #tpu.memory_space<vmem>>, vector<1x8x32xf32>
    %6 = vector.shape_cast %5 : vector<1x8x32xf32> to vector<8x32xf32>
    %7 = vector.shape_cast %4 : vector<8x32xf32> to vector<1x8x32xf32>
    tpu.vector_store %arg15[%c0_5, %c0_6, %c0_7], %7 {strides = array<i32>} : memref<1x8x32xf32, #tpu.memory_space<vmem>>, vector<1x8x32xf32>,
    %cst = arith.constant dense<0.000000e+00> : vector<8xf32>
    %8 = vector.multi_reduction <add>, %4, %cst [1] : vector<8x32xf32> to vector<8xf32>
    %9 = vector.shape_cast %8 : vector<8xf32> to vector<8x1xf32>
    %cst_8 = arith.constant 3.200000e+01 : f32
    %10 = vector.broadcast %cst_8 : f32 to vector<8x1xf32>
    %11 = arith.divf %9, %10 : vector<8x1xf32>
    %12 = vector.broadcast %11 : vector<8x1xf32> to vector<8x32xf32>
    %13 = arith.subf %4, %12 : vector<8x32xf32>
    %14 = arith.mulf %13, %13 : vector<8x32xf32>
    %cst_9 = arith.constant dense<0.000000e+00> : vector<8xf32>
    %15 = vector.multi_reduction <add>, %14, %cst_9 [1] : vector<8x32xf32> to vector<8xf32>
    %16 = vector.shape_cast %15 : vector<8xf32> to vector<8x1xf32>
    %cst_10 = arith.constant 3.200000e+01 : f32
    %17 = vector.broadcast %cst_10 : f32 to vector<8x1xf32>
    %18 = arith.divf %16, %17 : vector<8x1xf32>
    %cst_11 = arith.constant 9.99999974E-6 : f32
    %19 = vector.broadcast %cst_11 : f32 to vector<8x1xf32>
    %20 = arith.addf %18, %19 : vector<8x1xf32>
    %21 = math.rsqrt %20 : vector<8x1xf32>
    %22 = vector.broadcast %21 : vector<8x1xf32> to vector<8x32xf32>
    %23 = arith.mulf %13, %22 : vector<8x32xf32>
    %c0_12 = arith.constant 0 : index
    %c0_13 = arith.constant 0 : index
    %24 = vector.load %arg3[%c0_12, %c0_13] : memref<1x32xf32, #tpu.memory_space<vmem>>, vector<1x32xf32>
    %25 = vector.broadcast %24 : vector<1x32xf32> to vector<8x32xf32>
    %26 = arith.mulf %23, %25 : vector<8x32xf32>
    %c0_14 = arith.constant 0 : index
    %c0_15 = arith.constant 0 : index
    %27 = vector.load %arg4[%c0_14, %c0_15] : memref<1x32xf32, #tpu.memory_space<vmem>>, vector<1x32xf32>
    %28 = vector.broadcast %27 : vector<1x32xf32> to vector<8x32xf32>
    %29 = arith.addf %26, %28 : vector<8x32xf32>
    %30 = arith.truncf %29 : vector<8x32xf32> to vector<8x32xbf16>
    %c0_16 = arith.constant 0 : index
    %c0_17 = arith.constant 0 : index
    %31 = vector.load %arg5[%c0_16, %c0_17] : memref<32x128xbf16, #tpu.memory_space<vmem>>, vector<32x128xbf16>
    %cst_18 = arith.constant dense<0.000000e+00> : vector<8x128xf32>
    %32 = tpu.matmul %30, %31, %cst_18 {dimension_numbers = #tpu.dot_dimension_numbers<[1], [0], [0], [1], [0, 0, 1, 1], [], []>} : vector<8x32xbf16>, vector<32x128xbf16>, vector<8x128xf32> -> vector<8x128xf32>
    %33 = vector.extract_strided_slice %32 {offsets = [0, 0], sizes = [8, 64], strides = [1, 1]} : vector<8x128xf32> to vector<8x64xf32>
    %34 = vector.extract_strided_slice %32 {offsets = [0, 64], sizes = [8, 64], strides = [1, 1]} : vector<8x128xf32> to vector<8x64xf32>
    %cst_19 = arith.constant 0.000000e+00 : f32
    %35 = vector.broadcast %cst_19 : f32 to vector<3x64xf32>
    %c0_20 = arith.constant 0 : index
    %c0_21 = arith.constant 0 : index
    %36 = vector.load %arg16[%c0_20, %c0_21] : memref<11x64xf32, #tpu.memory_space<vmem>>, vector<3x64xf32>
    tpu.vector_store %arg16[%c0_20, %c0_21], %35 {strides = array<i32>} : memref<11x64xf32, #tpu.memory_space<vmem>>, vector<3x64xf32>,
    %c3 = arith.constant 3 : index
    %c0_22 = arith.constant 0 : index
    %37 = vector.load %arg16[%c3, %c0_22] : memref<11x64xf32, #tpu.memory_space<vmem>>, vector<8x64xf32>
    tpu.vector_store %arg16[%c3, %c0_22], %33 {strides = array<i32>} : memref<11x64xf32, #tpu.memory_space<vmem>>, vector<8x64xf32>,
    %cst_23 = arith.constant 0.000000e+00 : f32
    %38 = vector.broadcast %cst_23 : f32 to vector<8x64xf32>
    %c0_24 = arith.constant 0 : index
    %c0_25 = arith.constant 0 : index
    %39 = vector.load %arg16[%c0_24, %c0_25] : memref<11x64xf32, #tpu.memory_space<vmem>>, vector<8x64xf32>
    %c0_26 = arith.constant 0 : index
    %c0_27 = arith.constant 0 : index
    %40 = vector.load %arg6[%c0_26, %c0_27] : memref<4x64xf32, #tpu.memory_space<vmem>>, vector<1x64xf32>
    %41 = vector.broadcast %40 : vector<1x64xf32> to vector<8x64xf32>
    %42 = arith.mulf %39, %41 : vector<8x64xf32>
    %43 = arith.addf %38, %42 : vector<8x64xf32>
    %c1 = arith.constant 1 : index
    %c0_28 = arith.constant 0 : index
    %44 = vector.load %arg16[%c1, %c0_28] : memref<11x64xf32, #tpu.memory_space<vmem>>, vector<8x64xf32>
    %c1_29 = arith.constant 1 : index
    %c0_30 = arith.constant 0 : index
    %45 = vector.load %arg6[%c1_29, %c0_30] : memref<4x64xf32, #tpu.memory_space<vmem>>, vector<1x64xf32>
    %46 = vector.broadcast %45 : vector<1x64xf32> to vector<8x64xf32>
    %47 = arith.mulf %44, %46 : vector<8x64xf32>
    %48 = arith.addf %43, %47 : vector<8x64xf32>
    %c2 = arith.constant 2 : index
    %c0_31 = arith.constant 0 : index
    %49 = vector.load %arg16[%c2, %c0_31] : memref<11x64xf32, #tpu.memory_space<vmem>>, vector<8x64xf32>
    %c2_32 = arith.constant 2 : index
    %c0_33 = arith.constant 0 : index
    %50 = vector.load %arg6[%c2_32, %c0_33] : memref<4x64xf32, #tpu.memory_space<vmem>>, vector<1x64xf32>
    %51 = vector.broadcast %50 : vector<1x64xf32> to vector<8x64xf32>
    %52 = arith.mulf %49, %51 : vector<8x64xf32>
    %53 = arith.addf %48, %52 : vector<8x64xf32>
    %c3_34 = arith.constant 3 : index
    %c0_35 = arith.constant 0 : index
    %54 = vector.load %arg16[%c3_34, %c0_35] : memref<11x64xf32, #tpu.memory_space<vmem>>, vector<8x64xf32>
    %c3_36 = arith.constant 3 : index
    %c0_37 = arith.constant 0 : index
    %55 = vector.load %arg6[%c3_36, %c0_37] : memref<4x64xf32, #tpu.memory_space<vmem>>, vector<1x64xf32>
    %56 = vector.broadcast %55 : vector<1x64xf32> to vector<8x64xf32>
    %57 = arith.mulf %54, %56 : vector<8x64xf32>
    %58 = arith.addf %53, %57 : vector<8x64xf32>
    %c0_38 = arith.constant 0 : index
    %c0_39 = arith.constant 0 : index
    %59 = vector.load %arg7[%c0_38, %c0_39] : memref<1x64xf32, #tpu.memory_space<vmem>>, vector<1x64xf32>
    %60 = vector.broadcast %59 : vector<1x64xf32> to vector<8x64xf32>
    %61 = arith.addf %58, %60 : vector<8x64xf32>
    %62 = arith.negf %61 : vector<8x64xf32>
    %63 = math.exp %62 : vector<8x64xf32>
    %cst_40 = arith.constant 1.000000e+00 : f32
    %64 = vector.broadcast %cst_40 : f32 to vector<8x64xf32>
    %65 = arith.addf %64, %63 : vector<8x64xf32>
    %66 = arith.divf %64, %65 : vector<8x64xf32>
    %67 = arith.mulf %61, %66 : vector<8x64xf32>
    %68 = arith.truncf %67 : vector<8x64xf32> to vector<8x64xbf16>
    %c0_41 = arith.constant 0 : index
    %c0_42 = arith.constant 0 : index
    %69 = vector.load %arg8[%c0_41, %c0_42] : memref<64x34xbf16, #tpu.memory_space<vmem>>, vector<64x34xbf16>
    %cst_43 = arith.constant dense<0.000000e+00> : vector<8x34xf32>
    %70 = tpu.matmul %68, %69, %cst_43 {dimension_numbers = #tpu.dot_dimension_numbers<[1], [0], [0], [1], [0, 0, 1, 1], [], []>} : vector<8x64xbf16>, vector<64x34xbf16>, vector<8x34xf32> -> vector<8x34xf32>
    %71 = vector.extract_strided_slice %70 {offsets = [0, 0], sizes = [8, 2], strides = [1, 1]} : vector<8x34xf32> to vector<8x2xf32>
    %72 = vector.extract_strided_slice %70 {offsets = [0, 2], sizes = [8, 16], strides = [1, 1]} : vector<8x34xf32> to vector<8x16xf32>
    %73 = vector.extract_strided_slice %70 {offsets = [0, 18], sizes = [8, 16], strides = [1, 1]} : vector<8x34xf32> to vector<8x16xf32>
    %74 = arith.truncf %71 : vector<8x2xf32> to vector<8x2xbf16>
    %c0_44 = arith.constant 0 : index
    %c0_45 = arith.constant 0 : index
    %75 = vector.load %arg9[%c0_44, %c0_45] : memref<2x64xbf16, #tpu.memory_space<vmem>>, vector<2x64xbf16>
    %cst_46 = arith.constant dense<0.000000e+00> : vector<8x64xf32>
    %76 = tpu.matmul %74, %75, %cst_46 {dimension_numbers = #tpu.dot_dimension_numbers<[1], [0], [0], [1], [0, 0, 1, 1], [], []>} : vector<8x2xbf16>, vector<2x64xbf16>, vector<8x64xf32> -> vector<8x64xf32>
    %c0_47 = arith.constant 0 : index
    %c0_48 = arith.constant 0 : index
    %77 = vector.load %arg10[%c0_47, %c0_48] : memref<1x64xf32, #tpu.memory_space<vmem>>, vector<1x64xf32>
    %78 = vector.broadcast %77 : vector<1x64xf32> to vector<8x64xf32>
    %79 = arith.addf %76, %78 : vector<8x64xf32>
    %cst_49 = arith.constant 2.000000e+01 : f32
    %80 = vector.broadcast %cst_49 : f32 to vector<8x64xf32>
    %81 = arith.cmpf ogt, %79, %80 : vector<8x64xf32>
    %cst_50 = arith.constant 2.000000e+01 : f32
    %82 = vector.broadcast %cst_50 : f32 to vector<8x64xf32>
    %83 = arith.minimumf %79, %82 : vector<8x64xf32>
    %84 = math.exp %83 : vector<8x64xf32>
    %85 = math.log1p %84 : vector<8x64xf32>
    %86 = arith.select %81, %79, %85 : vector<8x64xi1>, vector<8x64xf32>
    %c0_51 = arith.constant 0 : index
    %c0_52 = arith.constant 0 : index
    %87 = vector.load %arg11[%c0_51, %c0_52] : memref<16x64xf32, #tpu.memory_space<vmem>>, vector<16x64xf32>
    %88 = math.exp %87 : vector<16x64xf32>
    %cst_53 = arith.constant 0.000000e+00 : f32
    %89 = vector.broadcast %cst_53 : f32 to vector<16x64xf32>
    %90 = arith.subf %89, %88 : vector<16x64xf32>
    %c0_54 = arith.constant 0 : index
    %c0_55 = arith.constant 0 : index
    %91 = vector.load %arg17[%c0_54, %c0_55] : memref<8x64xf32, #tpu.memory_space<vmem>>, vector<8x64xf32>
    tpu.vector_store %arg17[%c0_54, %c0_55], %86 {strides = array<i32>} : memref<8x64xf32, #tpu.memory_space<vmem>>, vector<8x64xf32>,
    %92 = arith.mulf %86, %67 : vector<8x64xf32>
    %c0_56 = arith.constant 0 : index
    %c0_57 = arith.constant 0 : index
    %93 = vector.load %arg18[%c0_56, %c0_57] : memref<8x64xf32, #tpu.memory_space<vmem>>, vector<8x64xf32>
    tpu.vector_store %arg18[%c0_56, %c0_57], %92 {strides = array<i32>} : memref<8x64xf32, #tpu.memory_space<vmem>>, vector<8x64xf32>,
    %94 = vector.shape_cast %72 : vector<8x16xf32> to vector<8x16x1xf32>
    %c0_58 = arith.constant 0 : index
    %c0_59 = arith.constant 0 : index
    %c0_60 = arith.constant 0 : index
    %95 = vector.load %arg19[%c0_58, %c0_59, %c0_60] : memref<8x16x1xf32, #tpu.memory_space<vmem>>, vector<8x16x1xf32>
    tpu.vector_store %arg19[%c0_58, %c0_59, %c0_60], %94 {strides = array<i32>} : memref<8x16x1xf32, #tpu.memory_space<vmem>>, vector<8x16x1xf32>,
    %96 = vector.shape_cast %73 : vector<8x16xf32> to vector<8x16x1xf32>
    %c0_61 = arith.constant 0 : index
    %c0_62 = arith.constant 0 : index
    %c0_63 = arith.constant 0 : index
    %97 = vector.load %arg20[%c0_61, %c0_62, %c0_63] : memref<8x16x1xf32, #tpu.memory_space<vmem>>, vector<8x16x1xf32>
    tpu.vector_store %arg20[%c0_61, %c0_62, %c0_63], %96 {strides = array<i32>} : memref<8x16x1xf32, #tpu.memory_space<vmem>>, vector<8x16x1xf32>,
    %cst_64 = arith.constant 0.000000e+00 : f32
    %98 = vector.broadcast %cst_64 : f32 to vector<16x64xf32>
    %c0_i32 = arith.constant 0 : i32
    %99 = arith.index_cast %c0_i32 : i32 to index
    %c0_65 = arith.constant 0 : index
    %100 = vector.load %arg17[%99, %c0_65] : memref<8x64xf32, #tpu.memory_space<vmem>>, vector<1x64xf32>
    %101 = vector.broadcast %100 : vector<1x64xf32> to vector<16x64xf32>
    %102 = arith.mulf %101, %90 : vector<16x64xf32>
    %103 = math.exp %102 : vector<16x64xf32>
    %104 = arith.mulf %103, %98 : vector<16x64xf32>
    %105 = arith.index_cast %c0_i32 : i32 to index
    %c0_66 = arith.constant 0 : index
    %106 = vector.load %arg18[%105, %c0_66] : memref<8x64xf32, #tpu.memory_space<vmem>>, vector<1x64xf32>
    %107 = arith.index_cast %c0_i32 : i32 to index
    %c0_67 = arith.constant 0 : index
    %c0_68 = arith.constant 0 : index
    %108 = vector.load %arg19[%107, %c0_67, %c0_68] : memref<8x16x1xf32, #tpu.memory_space<vmem>>, vector<1x16x1xf32>
    %109 = vector.shape_cast %108 : vector<1x16x1xf32> to vector<16x1xf32>
    %110 = vector.broadcast %106 : vector<1x64xf32> to vector<16x64xf32>
    %111 = vector.broadcast %109 : vector<16x1xf32> to vector<16x64xf32>
    %112 = arith.mulf %110, %111 : vector<16x64xf32>
    %113 = arith.addf %104, %112 : vector<16x64xf32>
    %114 = arith.index_cast %c0_i32 : i32 to index
    %c0_69 = arith.constant 0 : index
    %c0_70 = arith.constant 0 : index
    %115 = vector.load %arg20[%114, %c0_69, %c0_70] : memref<8x16x1xf32, #tpu.memory_space<vmem>>, vector<1x16x1xf32>
    %116 = vector.shape_cast %115 : vector<1x16x1xf32> to vector<16x1xf32>
    %117 = vector.broadcast %116 : vector<16x1xf32> to vector<16x64xf32>
    %118 = arith.mulf %117, %113 : vector<16x64xf32>
    %cst_71 = arith.constant dense<0.000000e+00> : vector<64xf32>
    %119 = vector.multi_reduction <add>, %118, %cst_71 [0] : vector<16x64xf32> to vector<64xf32>
    %120 = vector.shape_cast %119 : vector<64xf32> to vector<1x64xf32>
    %121 = arith.index_cast %c0_i32 : i32 to index
    %c0_72 = arith.constant 0 : index
    %122 = vector.load %arg21[%121, %c0_72] : memref<8x64xf32, #tpu.memory_space<vmem>>, vector<1x64xf32>
    tpu.vector_store %arg21[%121, %c0_72], %120 {strides = array<i32>} : memref<8x64xf32, #tpu.memory_space<vmem>>, vector<1x64xf32>,
    %c1_i32 = arith.constant 1 : i32
    %123 = arith.index_cast %c1_i32 : i32 to index
    %c0_73 = arith.constant 0 : index
    %124 = vector.load %arg17[%123, %c0_73] : memref<8x64xf32, #tpu.memory_space<vmem>>, vector<1x64xf32>
    %125 = vector.broadcast %124 : vector<1x64xf32> to vector<16x64xf32>
    %126 = arith.mulf %125, %90 : vector<16x64xf32>
    %127 = math.exp %126 : vector<16x64xf32>
    %128 = arith.mulf %127, %113 : vector<16x64xf32>
    %129 = arith.index_cast %c1_i32 : i32 to index
    %c0_74 = arith.constant 0 : index
    %130 = vector.load %arg18[%129, %c0_74] : memref<8x64xf32, #tpu.memory_space<vmem>>, vector<1x64xf32>
    %131 = arith.index_cast %c1_i32 : i32 to index
    %c0_75 = arith.constant 0 : index
    %c0_76 = arith.constant 0 : index
    %132 = vector.load %arg19[%131, %c0_75, %c0_76] : memref<8x16x1xf32, #tpu.memory_space<vmem>>, vector<1x16x1xf32>
    %133 = vector.shape_cast %132 : vector<1x16x1xf32> to vector<16x1xf32>
    %134 = vector.broadcast %130 : vector<1x64xf32> to vector<16x64xf32>
    %135 = vector.broadcast %133 : vector<16x1xf32> to vector<16x64xf32>
    %136 = arith.mulf %134, %135 : vector<16x64xf32>
    %137 = arith.addf %128, %136 : vector<16x64xf32>
    %138 = arith.index_cast %c1_i32 : i32 to index
    %c0_77 = arith.constant 0 : index
    %c0_78 = arith.constant 0 : index
    %139 = vector.load %arg20[%138, %c0_77, %c0_78] : memref<8x16x1xf32, #tpu.memory_space<vmem>>, vector<1x16x1xf32>
    %140 = vector.shape_cast %139 : vector<1x16x1xf32> to vector<16x1xf32>
    %141 = vector.broadcast %140 : vector<16x1xf32> to vector<16x64xf32>
    %142 = arith.mulf %141, %137 : vector<16x64xf32>
    %cst_79 = arith.constant dense<0.000000e+00> : vector<64xf32>
    %143 = vector.multi_reduction <add>, %142, %cst_79 [0] : vector<16x64xf32> to vector<64xf32>
    %144 = vector.shape_cast %143 : vector<64xf32> to vector<1x64xf32>
    %145 = arith.index_cast %c1_i32 : i32 to index
    %c0_80 = arith.constant 0 : index
    %146 = vector.load %arg21[%145, %c0_80] : memref<8x64xf32, #tpu.memory_space<vmem>>, vector<1x64xf32>
    tpu.vector_store %arg21[%145, %c0_80], %144 {strides = array<i32>} : memref<8x64xf32, #tpu.memory_space<vmem>>, vector<1x64xf32>,
    %c2_i32 = arith.constant 2 : i32
    %147 = arith.index_cast %c2_i32 : i32 to index
    %c0_81 = arith.constant 0 : index
    %148 = vector.load %arg17[%147, %c0_81] : memref<8x64xf32, #tpu.memory_space<vmem>>, vector<1x64xf32>
    %149 = vector.broadcast %148 : vector<1x64xf32> to vector<16x64xf32>
    %150 = arith.mulf %149, %90 : vector<16x64xf32>
    %151 = math.exp %150 : vector<16x64xf32>
    %152 = arith.mulf %151, %137 : vector<16x64xf32>
    %153 = arith.index_cast %c2_i32 : i32 to index
    %c0_82 = arith.constant 0 : index
    %154 = vector.load %arg18[%153, %c0_82] : memref<8x64xf32, #tpu.memory_space<vmem>>, vector<1x64xf32>
    %155 = arith.index_cast %c2_i32 : i32 to index
    %c0_83 = arith.constant 0 : index
    %c0_84 = arith.constant 0 : index
    %156 = vector.load %arg19[%155, %c0_83, %c0_84] : memref<8x16x1xf32, #tpu.memory_space<vmem>>, vector<1x16x1xf32>
    %157 = vector.shape_cast %156 : vector<1x16x1xf32> to vector<16x1xf32>
    %158 = vector.broadcast %154 : vector<1x64xf32> to vector<16x64xf32>
    %159 = vector.broadcast %157 : vector<16x1xf32> to vector<16x64xf32>
    %160 = arith.mulf %158, %159 : vector<16x64xf32>
    %161 = arith.addf %152, %160 : vector<16x64xf32>
    %162 = arith.index_cast %c2_i32 : i32 to index
    %c0_85 = arith.constant 0 : index
    %c0_86 = arith.constant 0 : index
    %163 = vector.load %arg20[%162, %c0_85, %c0_86] : memref<8x16x1xf32, #tpu.memory_space<vmem>>, vector<1x16x1xf32>
    %164 = vector.shape_cast %163 : vector<1x16x1xf32> to vector<16x1xf32>
    %165 = vector.broadcast %164 : vector<16x1xf32> to vector<16x64xf32>
    %166 = arith.mulf %165, %161 : vector<16x64xf32>
    %cst_87 = arith.constant dense<0.000000e+00> : vector<64xf32>
    %167 = vector.multi_reduction <add>, %166, %cst_87 [0] : vector<16x64xf32> to vector<64xf32>
    %168 = vector.shape_cast %167 : vector<64xf32> to vector<1x64xf32>
    %169 = arith.index_cast %c2_i32 : i32 to index
    %c0_88 = arith.constant 0 : index
    %170 = vector.load %arg21[%169, %c0_88] : memref<8x64xf32, #tpu.memory_space<vmem>>, vector<1x64xf32>
    tpu.vector_store %arg21[%169, %c0_88], %168 {strides = array<i32>} : memref<8x64xf32, #tpu.memory_space<vmem>>, vector<1x64xf32>,
    %c3_i32 = arith.constant 3 : i32
    %171 = arith.index_cast %c3_i32 : i32 to index
    %c0_89 = arith.constant 0 : index
    %172 = vector.load %arg17[%171, %c0_89] : memref<8x64xf32, #tpu.memory_space<vmem>>, vector<1x64xf32>
    %173 = vector.broadcast %172 : vector<1x64xf32> to vector<16x64xf32>
    %174 = arith.mulf %173, %90 : vector<16x64xf32>
    %175 = math.exp %174 : vector<16x64xf32>
    %176 = arith.mulf %175, %161 : vector<16x64xf32>
    %177 = arith.index_cast %c3_i32 : i32 to index
    %c0_90 = arith.constant 0 : index
    %178 = vector.load %arg18[%177, %c0_90] : memref<8x64xf32, #tpu.memory_space<vmem>>, vector<1x64xf32>
    %179 = arith.index_cast %c3_i32 : i32 to index
    %c0_91 = arith.constant 0 : index
    %c0_92 = arith.constant 0 : index
    %180 = vector.load %arg19[%179, %c0_91, %c0_92] : memref<8x16x1xf32, #tpu.memory_space<vmem>>, vector<1x16x1xf32>
    %181 = vector.shape_cast %180 : vector<1x16x1xf32> to vector<16x1xf32>
    %182 = vector.broadcast %178 : vector<1x64xf32> to vector<16x64xf32>
    %183 = vector.broadcast %181 : vector<16x1xf32> to vector<16x64xf32>
    %184 = arith.mulf %182, %183 : vector<16x64xf32>
    %185 = arith.addf %176, %184 : vector<16x64xf32>
    %186 = arith.index_cast %c3_i32 : i32 to index
    %c0_93 = arith.constant 0 : index
    %c0_94 = arith.constant 0 : index
    %187 = vector.load %arg20[%186, %c0_93, %c0_94] : memref<8x16x1xf32, #tpu.memory_space<vmem>>, vector<1x16x1xf32>
    %188 = vector.shape_cast %187 : vector<1x16x1xf32> to vector<16x1xf32>
    %189 = vector.broadcast %188 : vector<16x1xf32> to vector<16x64xf32>
    %190 = arith.mulf %189, %185 : vector<16x64xf32>
    %cst_95 = arith.constant dense<0.000000e+00> : vector<64xf32>
    %191 = vector.multi_reduction <add>, %190, %cst_95 [0] : vector<16x64xf32> to vector<64xf32>
    %192 = vector.shape_cast %191 : vector<64xf32> to vector<1x64xf32>
    %193 = arith.index_cast %c3_i32 : i32 to index
    %c0_96 = arith.constant 0 : index
    %194 = vector.load %arg21[%193, %c0_96] : memref<8x64xf32, #tpu.memory_space<vmem>>, vector<1x64xf32>
    tpu.vector_store %arg21[%193, %c0_96], %192 {strides = array<i32>} : memref<8x64xf32, #tpu.memory_space<vmem>>, vector<1x64xf32>,
    %c4_i32 = arith.constant 4 : i32
    %195 = arith.index_cast %c4_i32 : i32 to index
    %c0_97 = arith.constant 0 : index
    %196 = vector.load %arg17[%195, %c0_97] : memref<8x64xf32, #tpu.memory_space<vmem>>, vector<1x64xf32>
    %197 = vector.broadcast %196 : vector<1x64xf32> to vector<16x64xf32>
    %198 = arith.mulf %197, %90 : vector<16x64xf32>
    %199 = math.exp %198 : vector<16x64xf32>
    %200 = arith.mulf %199, %185 : vector<16x64xf32>
    %201 = arith.index_cast %c4_i32 : i32 to index
    %c0_98 = arith.constant 0 : index
    %202 = vector.load %arg18[%201, %c0_98] : memref<8x64xf32, #tpu.memory_space<vmem>>, vector<1x64xf32>
    %203 = arith.index_cast %c4_i32 : i32 to index
    %c0_99 = arith.constant 0 : index
    %c0_100 = arith.constant 0 : index
    %204 = vector.load %arg19[%203, %c0_99, %c0_100] : memref<8x16x1xf32, #tpu.memory_space<vmem>>, vector<1x16x1xf32>
    %205 = vector.shape_cast %204 : vector<1x16x1xf32> to vector<16x1xf32>
    %206 = vector.broadcast %202 : vector<1x64xf32> to vector<16x64xf32>
    %207 = vector.broadcast %205 : vector<16x1xf32> to vector<16x64xf32>
    %208 = arith.mulf %206, %207 : vector<16x64xf32>
    %209 = arith.addf %200, %208 : vector<16x64xf32>
    %210 = arith.index_cast %c4_i32 : i32 to index
    %c0_101 = arith.constant 0 : index
    %c0_102 = arith.constant 0 : index
    %211 = vector.load %arg20[%210, %c0_101, %c0_102] : memref<8x16x1xf32, #tpu.memory_space<vmem>>, vector<1x16x1xf32>
    %212 = vector.shape_cast %211 : vector<1x16x1xf32> to vector<16x1xf32>
    %213 = vector.broadcast %212 : vector<16x1xf32> to vector<16x64xf32>
    %214 = arith.mulf %213, %209 : vector<16x64xf32>
    %cst_103 = arith.constant dense<0.000000e+00> : vector<64xf32>
    %215 = vector.multi_reduction <add>, %214, %cst_103 [0] : vector<16x64xf32> to vector<64xf32>
    %216 = vector.shape_cast %215 : vector<64xf32> to vector<1x64xf32>
    %217 = arith.index_cast %c4_i32 : i32 to index
    %c0_104 = arith.constant 0 : index
    %218 = vector.load %arg21[%217, %c0_104] : memref<8x64xf32, #tpu.memory_space<vmem>>, vector<1x64xf32>
    tpu.vector_store %arg21[%217, %c0_104], %216 {strides = array<i32>} : memref<8x64xf32, #tpu.memory_space<vmem>>, vector<1x64xf32>,
    %c5_i32 = arith.constant 5 : i32
    %219 = arith.index_cast %c5_i32 : i32 to index
    %c0_105 = arith.constant 0 : index
    %220 = vector.load %arg17[%219, %c0_105] : memref<8x64xf32, #tpu.memory_space<vmem>>, vector<1x64xf32>
    %221 = vector.broadcast %220 : vector<1x64xf32> to vector<16x64xf32>
    %222 = arith.mulf %221, %90 : vector<16x64xf32>
    %223 = math.exp %222 : vector<16x64xf32>
    %224 = arith.mulf %223, %209 : vector<16x64xf32>
    %225 = arith.index_cast %c5_i32 : i32 to index
    %c0_106 = arith.constant 0 : index
    %226 = vector.load %arg18[%225, %c0_106] : memref<8x64xf32, #tpu.memory_space<vmem>>, vector<1x64xf32>
    %227 = arith.index_cast %c5_i32 : i32 to index
    %c0_107 = arith.constant 0 : index
    %c0_108 = arith.constant 0 : index
    %228 = vector.load %arg19[%227, %c0_107, %c0_108] : memref<8x16x1xf32, #tpu.memory_space<vmem>>, vector<1x16x1xf32>
    %229 = vector.shape_cast %228 : vector<1x16x1xf32> to vector<16x1xf32>
    %230 = vector.broadcast %226 : vector<1x64xf32> to vector<16x64xf32>
    %231 = vector.broadcast %229 : vector<16x1xf32> to vector<16x64xf32>
    %232 = arith.mulf %230, %231 : vector<16x64xf32>
    %233 = arith.addf %224, %232 : vector<16x64xf32>
    %234 = arith.index_cast %c5_i32 : i32 to index
    %c0_109 = arith.constant 0 : index
    %c0_110 = arith.constant 0 : index
    %235 = vector.load %arg20[%234, %c0_109, %c0_110] : memref<8x16x1xf32, #tpu.memory_space<vmem>>, vector<1x16x1xf32>
    %236 = vector.shape_cast %235 : vector<1x16x1xf32> to vector<16x1xf32>
    %237 = vector.broadcast %236 : vector<16x1xf32> to vector<16x64xf32>
    %238 = arith.mulf %237, %233 : vector<16x64xf32>
    %cst_111 = arith.constant dense<0.000000e+00> : vector<64xf32>
    %239 = vector.multi_reduction <add>, %238, %cst_111 [0] : vector<16x64xf32> to vector<64xf32>
    %240 = vector.shape_cast %239 : vector<64xf32> to vector<1x64xf32>
    %241 = arith.index_cast %c5_i32 : i32 to index
    %c0_112 = arith.constant 0 : index
    %242 = vector.load %arg21[%241, %c0_112] : memref<8x64xf32, #tpu.memory_space<vmem>>, vector<1x64xf32>
    tpu.vector_store %arg21[%241, %c0_112], %240 {strides = array<i32>} : memref<8x64xf32, #tpu.memory_space<vmem>>, vector<1x64xf32>,
    %c6_i32 = arith.constant 6 : i32
    %243 = arith.index_cast %c6_i32 : i32 to index
    %c0_113 = arith.constant 0 : index
    %244 = vector.load %arg17[%243, %c0_113] : memref<8x64xf32, #tpu.memory_space<vmem>>, vector<1x64xf32>
    %245 = vector.broadcast %244 : vector<1x64xf32> to vector<16x64xf32>
    %246 = arith.mulf %245, %90 : vector<16x64xf32>
    %247 = math.exp %246 : vector<16x64xf32>
    %248 = arith.mulf %247, %233 : vector<16x64xf32>
    %249 = arith.index_cast %c6_i32 : i32 to index
    %c0_114 = arith.constant 0 : index
    %250 = vector.load %arg18[%249, %c0_114] : memref<8x64xf32, #tpu.memory_space<vmem>>, vector<1x64xf32>
    %251 = arith.index_cast %c6_i32 : i32 to index
    %c0_115 = arith.constant 0 : index
    %c0_116 = arith.constant 0 : index
    %252 = vector.load %arg19[%251, %c0_115, %c0_116] : memref<8x16x1xf32, #tpu.memory_space<vmem>>, vector<1x16x1xf32>
    %253 = vector.shape_cast %252 : vector<1x16x1xf32> to vector<16x1xf32>
    %254 = vector.broadcast %250 : vector<1x64xf32> to vector<16x64xf32>
    %255 = vector.broadcast %253 : vector<16x1xf32> to vector<16x64xf32>
    %256 = arith.mulf %254, %255 : vector<16x64xf32>
    %257 = arith.addf %248, %256 : vector<16x64xf32>
    %258 = arith.index_cast %c6_i32 : i32 to index
    %c0_117 = arith.constant 0 : index
    %c0_118 = arith.constant 0 : index
    %259 = vector.load %arg20[%258, %c0_117, %c0_118] : memref<8x16x1xf32, #tpu.memory_space<vmem>>, vector<1x16x1xf32>
    %260 = vector.shape_cast %259 : vector<1x16x1xf32> to vector<16x1xf32>
    %261 = vector.broadcast %260 : vector<16x1xf32> to vector<16x64xf32>
    %262 = arith.mulf %261, %257 : vector<16x64xf32>
    %cst_119 = arith.constant dense<0.000000e+00> : vector<64xf32>
    %263 = vector.multi_reduction <add>, %262, %cst_119 [0] : vector<16x64xf32> to vector<64xf32>
    %264 = vector.shape_cast %263 : vector<64xf32> to vector<1x64xf32>
    %265 = arith.index_cast %c6_i32 : i32 to index
    %c0_120 = arith.constant 0 : index
    %266 = vector.load %arg21[%265, %c0_120] : memref<8x64xf32, #tpu.memory_space<vmem>>, vector<1x64xf32>
    tpu.vector_store %arg21[%265, %c0_120], %264 {strides = array<i32>} : memref<8x64xf32, #tpu.memory_space<vmem>>, vector<1x64xf32>,
    %c7_i32 = arith.constant 7 : i32
    %267 = arith.index_cast %c7_i32 : i32 to index
    %c0_121 = arith.constant 0 : index
    %268 = vector.load %arg17[%267, %c0_121] : memref<8x64xf32, #tpu.memory_space<vmem>>, vector<1x64xf32>
    %269 = vector.broadcast %268 : vector<1x64xf32> to vector<16x64xf32>
    %270 = arith.mulf %269, %90 : vector<16x64xf32>
    %271 = math.exp %270 : vector<16x64xf32>
    %272 = arith.mulf %271, %257 : vector<16x64xf32>
    %273 = arith.index_cast %c7_i32 : i32 to index
    %c0_122 = arith.constant 0 : index
    %274 = vector.load %arg18[%273, %c0_122] : memref<8x64xf32, #tpu.memory_space<vmem>>, vector<1x64xf32>
    %275 = arith.index_cast %c7_i32 : i32 to index
    %c0_123 = arith.constant 0 : index
    %c0_124 = arith.constant 0 : index
    %276 = vector.load %arg19[%275, %c0_123, %c0_124] : memref<8x16x1xf32, #tpu.memory_space<vmem>>, vector<1x16x1xf32>
    %277 = vector.shape_cast %276 : vector<1x16x1xf32> to vector<16x1xf32>
    %278 = vector.broadcast %274 : vector<1x64xf32> to vector<16x64xf32>
    %279 = vector.broadcast %277 : vector<16x1xf32> to vector<16x64xf32>
    %280 = arith.mulf %278, %279 : vector<16x64xf32>
    %281 = arith.addf %272, %280 : vector<16x64xf32>
    %282 = arith.index_cast %c7_i32 : i32 to index
    %c0_125 = arith.constant 0 : index
    %c0_126 = arith.constant 0 : index
    %283 = vector.load %arg20[%282, %c0_125, %c0_126] : memref<8x16x1xf32, #tpu.memory_space<vmem>>, vector<1x16x1xf32>
    %284 = vector.shape_cast %283 : vector<1x16x1xf32> to vector<16x1xf32>
    %285 = vector.broadcast %284 : vector<16x1xf32> to vector<16x64xf32>
    %286 = arith.mulf %285, %281 : vector<16x64xf32>
    %cst_127 = arith.constant dense<0.000000e+00> : vector<64xf32>
    %287 = vector.multi_reduction <add>, %286, %cst_127 [0] : vector<16x64xf32> to vector<64xf32>
    %288 = vector.shape_cast %287 : vector<64xf32> to vector<1x64xf32>
    %289 = arith.index_cast %c7_i32 : i32 to index
    %c0_128 = arith.constant 0 : index
    %290 = vector.load %arg21[%289, %c0_128] : memref<8x64xf32, #tpu.memory_space<vmem>>, vector<1x64xf32>
    tpu.vector_store %arg21[%289, %c0_128], %288 {strides = array<i32>} : memref<8x64xf32, #tpu.memory_space<vmem>>, vector<1x64xf32>,
    %c8_i32 = arith.constant 8 : i32
    %c0_129 = arith.constant 0 : index
    %c0_130 = arith.constant 0 : index
    %291 = vector.load %arg21[%c0_129, %c0_130] : memref<8x64xf32, #tpu.memory_space<vmem>>, vector<8x64xf32>
    %c0_131 = arith.constant 0 : index
    %c0_132 = arith.constant 0 : index
    %292 = vector.load %arg12[%c0_131, %c0_132] : memref<1x64xf32, #tpu.memory_space<vmem>>, vector<1x64xf32>
    %293 = vector.broadcast %292 : vector<1x64xf32> to vector<8x64xf32>
    %294 = arith.mulf %67, %293 : vector<8x64xf32>
    %295 = arith.addf %291, %294 : vector<8x64xf32>
    %296 = arith.negf %34 : vector<8x64xf32>
    %297 = math.exp %296 : vector<8x64xf32>
    %cst_133 = arith.constant 1.000000e+00 : f32
    %298 = vector.broadcast %cst_133 : f32 to vector<8x64xf32>
    %299 = arith.addf %298, %297 : vector<8x64xf32>
    %300 = arith.divf %298, %299 : vector<8x64xf32>
    %301 = arith.mulf %34, %300 : vector<8x64xf32>
    %302 = arith.mulf %295, %301 : vector<8x64xf32>
    %303 = arith.truncf %302 : vector<8x64xf32> to vector<8x64xbf16>
    %c0_134 = arith.constant 0 : index
    %c0_135 = arith.constant 0 : index
    %304 = vector.load %arg13[%c0_134, %c0_135] : memref<64x32xbf16, #tpu.memory_space<vmem>>, vector<64x32xbf16>
    %cst_136 = arith.constant dense<0.000000e+00> : vector<8x32xf32>
    %305 = tpu.matmul %303, %304, %cst_136 {dimension_numbers = #tpu.dot_dimension_numbers<[1], [0], [0], [1], [0, 0, 1, 1], [], []>} : vector<8x64xbf16>, vector<64x32xbf16>, vector<8x32xf32> -> vector<8x32xf32>
    %c0_137 = arith.constant 0 : index
    %c0_138 = arith.constant 0 : index
    %c0_139 = arith.constant 0 : index
    %306 = vector.load %arg14[%c0_137, %c0_138, %c0_139] : memref<1x8x32xf32, #tpu.memory_space<vmem>>, vector<1x8x32xf32>
    %307 = vector.shape_cast %306 : vector<1x8x32xf32> to vector<8x32xf32>
    %308 = vector.shape_cast %305 : vector<8x32xf32> to vector<1x8x32xf32>
    tpu.vector_store %arg14[%c0_137, %c0_138, %c0_139], %308 {strides = array<i32>} : memref<1x8x32xf32, #tpu.memory_space<vmem>>, vector<1x8x32xf32>,
    return
  }
  func.func @transform_0(%arg0: i32) -> (i32, i32, i32) {
    %c0_i32 = arith.constant 0 : i32
    %c0_i32_0 = arith.constant 0 : i32
    %c0_i32_1 = arith.constant 0 : i32
    return %arg0, %c0_i32, %c0_i32_0 : i32, i32, i32
  }
  func.func @transform_1(%arg0: i32) -> (i32, i32, i32) {
    %c0_i32 = arith.constant 0 : i32
    %c0_i32_0 = arith.constant 0 : i32
    %c0_i32_1 = arith.constant 0 : i32
    return %arg0, %c0_i32, %c0_i32_0 : i32, i32, i32
  }
  func.func @transform_2(%arg0: i32) -> (i32, i32) {
    %c0_i32 = arith.constant 0 : i32
    %c0_i32_0 = arith.constant 0 : i32
    %c0_i32_1 = arith.constant 0 : i32
    return %c0_i32, %c0_i32_0 : i32, i32
  }
  func.func @transform_3(%arg0: i32) -> (i32, i32) {
    %c0_i32 = arith.constant 0 : i32
    %c0_i32_0 = arith.constant 0 : i32
    %c0_i32_1 = arith.constant 0 : i32
    return %c0_i32, %c0_i32_0 : i32, i32
  }
  func.func @transform_4(%arg0: i32) -> (i32, i32) {
    %c0_i32 = arith.constant 0 : i32
    %c0_i32_0 = arith.constant 0 : i32
    %c0_i32_1 = arith.constant 0 : i32
    return %c0_i32, %c0_i32_0 : i32, i32
  }
  func.func @transform_5(%arg0: i32) -> (i32, i32) {
    %c0_i32 = arith.constant 0 : i32
    %c0_i32_0 = arith.constant 0 : i32
    %c0_i32_1 = arith.constant 0 : i32
    return %c0_i32, %c0_i32_0 : i32, i32
  }
  func.func @transform_6(%arg0: i32) -> (i32, i32) {
    %c0_i32 = arith.constant 0 : i32
    %c0_i32_0 = arith.constant 0 : i32
    %c0_i32_1 = arith.constant 0 : i32
    return %c0_i32, %c0_i32_0 : i32, i32
  }
  func.func @transform_7(%arg0: i32) -> (i32, i32) {
    %c0_i32 = arith.constant 0 : i32
    %c0_i32_0 = arith.constant 0 : i32
    %c0_i32_1 = arith.constant 0 : i32
    return %c0_i32, %c0_i32_0 : i32, i32
  }
  func.func @transform_8(%arg0: i32) -> (i32, i32) {
    %c0_i32 = arith.constant 0 : i32
    %c0_i32_0 = arith.constant 0 : i32
    %c0_i32_1 = arith.constant 0 : i32
    return %c0_i32, %c0_i32_0 : i32, i32
  }
  func.func @transform_9(%arg0: i32) -> (i32, i32) {
    %c0_i32 = arith.constant 0 : i32
    %c0_i32_0 = arith.constant 0 : i32
    %c0_i32_1 = arith.constant 0 : i32
    return %c0_i32, %c0_i32_0 : i32, i32
  }
  func.func @transform_10(%arg0: i32) -> (i32, i32) {
    %c0_i32 = arith.constant 0 : i32
    %c0_i32_0 = arith.constant 0 : i32
    %c0_i32_1 = arith.constant 0 : i32
    return %c0_i32, %c0_i32_0 : i32, i32
  }
  func.func @transform_11(%arg0: i32) -> (i32, i32) {
    %c0_i32 = arith.constant 0 : i32
    %c0_i32_0 = arith.constant 0 : i32
    %c0_i32_1 = arith.constant 0 : i32
    return %c0_i32, %c0_i32_0 : i32, i32
  }
  func.func @transform_12(%arg0: i32) -> (i32, i32) {
    %c0_i32 = arith.constant 0 : i32
    %c0_i32_0 = arith.constant 0 : i32
    %c0_i32_1 = arith.constant 0 : i32
    return %c0_i32, %c0_i32_0 : i32, i32
  }
  func.func @transform_13(%arg0: i32) -> (i32, i32, i32) {
    %c0_i32 = arith.constant 0 : i32
    %c0_i32_0 = arith.constant 0 : i32
    %c0_i32_1 = arith.constant 0 : i32
    return %arg0, %c0_i32, %c0_i32_0 : i32, i32, i32
  }
  func.func @transform_14(%arg0: i32) -> (i32, i32, i32) {
    %c0_i32 = arith.constant 0 : i32
    %c0_i32_0 = arith.constant 0 : i32
    %c0_i32_1 = arith.constant 0 : i32
    return %arg0, %c0_i32, %c0_i32_0 : i32, i32, i32
  }
}

</mosaic_0001>

<bundles_post_ra>
// kernel: block_forward.1
= control target key start
LH: loop header
LB: loop body
LE: loop exit
PB: predicated region body
PF: predicated region fallthrough
CT: control target
= control target key end

     0   :  { %s2319_s0 = inlined_call_operand.vmem [shape: f32[2,8,32], index: 0, kind: input, shape index: {}]   ;;  %s2320_s1 = inlined_call_operand.vmem [shape: f32[2,8,32], index: 1, kind: input, shape index: {}]   ;;  %s2321_s2 = inlined_call_operand.vmem [shape: f32[1,32], index: 2, kind: input, shape index: {}]   ;;  %s2322_s3 = inlined_call_operand.vmem [shape: f32[1,32], index: 3, kind: input, shape index: {}]   ;;  %s2323_s4 = inlined_call_operand.vmem [shape: bf16[32,128], index: 4, kind: input, shape index: {}]   ;;  %s2324_s5 = inlined_call_operand.vmem [shape: f32[4,64], index: 5, kind: input, shape index: {}]   ;;  %s2325_s6 = inlined_call_operand.vmem [shape: f32[1,64], index: 6, kind: input, shape index: {}]   ;;  %s2326_s7 = inlined_call_operand.vmem [shape: bf16[64,34], index: 7, kind: input, shape index: {}]   ;;  %s2327_s8 = inlined_call_operand.vmem [shape: bf16[2,64], index: 8, kind: input, shape index: {}]   ;;  %s2328_s9 = inlined_call_operand.vmem [shape: f32[1,64], index: 9, kind: input, shape index: {}]   ;;  %s2329_s10 = inlined_call_operand.vmem [shape: f32[16,64], index: 10, kind: input, shape index: {}]   ;;  %s2330_s11 = inlined_call_operand.vmem [shape: f32[1,64], index: 11, kind: input, shape index: {}]   ;;  %s2331_s12 = inlined_call_operand.vmem [shape: bf16[64,32], index: 12, kind: input, shape index: {}]   ;;  %s2332_s13 = inlined_call_operand.hbm [shape: f32[2,8,32], index: 13, kind: output, shape index: {0}]   ;;  %s2333_s14 = inlined_call_operand.hbm [shape: f32[2,8,32], index: 14, kind: output, shape index: {1}]  }
   0x1   :  { %2334 = sst [smem:[#allocation15_spill]] %s2319_s0 }
   0x2   :  { %2335 = sst [smem:[#allocation16_spill]] %s2320_s1 }
   0x3   :  { %2336 = sst [smem:[#allocation17_spill]] %s2321_s2 }
   0x4   :  { %2337 = sst [smem:[#allocation18_spill]] %s2322_s3 }
   0x5   :  { %2338 = sst [smem:[#allocation19_spill]] %s2323_s4 }
   0x6   :  { %2339 = sst [smem:[#allocation20_spill]] %s2324_s5 }
   0x7   :  { %2340 = sst [smem:[#allocation21_spill]] %s2325_s6 }
   0x8   :  { %2341 = sst [smem:[#allocation22_spill]] %s2326_s7 }
   0x9   :  { %20 = vsyncpa [#allocation9], 0 }
   0xa   :  { %22 = vsyncpa [#allocation9 + $0x1], 0 }
   0xb   :  { %23 = vsyncpa [#allocation11], 0 }
   0xc   :  { %25 = vsyncpa [#allocation11 + $0x1], 0  ;;  %s1994_s29 = smov 0   ;;  %s1996_s30 = smov 0  }
   0xd   :  { %s1998_s15 = smov 0   ;;  %s2000_s16 = smov 0  }
   0xe LB: > { %s2015_s17 = sadd.s32 4294967295, %s1913_s16   ;;  %s1604_s18 = sadd.s32 4294967294, %s1913_s16   ;;  %s1913_s16 = sphi %s2000_s16, %s2357_s16   ;;  %s1909_s15 = sphi %s1998_s15, %s2356_s15   ;;  %s1905_s30 = sphi %s1996_s30, %s2355_s30   ;;  %s1901_s29 = sphi %s1994_s29, %s2354_s29  }
   0xf   : > { %s2019_s19 = sadd.s32 1, %s1913_s16   ;;  %s321_s20 = sadd.s32 1, %s1909_s15 }
  0x10   : > { %s318_s21 = ssub.s32 %s1913_s16, %s2019_s19  ;;  %p331_p0 = scmp.ne.s32.totalorder %s1909_s15, %s1905_s30 }
  0x11   : > { %p319_p1 = scmp.eq.s32.totalorder %s318_s21, 0  ;;  %p332_p2 = scmp.eq.s32.totalorder %s2015_s17, 1 }
  0x12   : > { %p337_p3 = scmp.ne.s32.totalorder %s1905_s30, %s1901_s29  ;;  %p338_p4 = scmp.eq.s32.totalorder %s1604_s18, 1 }
  0x13   : > { %s2030_s22 = scalar_select %p319_p1, %s1909_s15, %s321_s20  }
  0x14   : > { %p2032_p5 = por %p332_p2, %p331_p0  ;;  %p2036_p6 = por %p338_p4, %p337_p3 }
  0x15   : > { %2342 = sst [smem:[#allocation14_spill]] %s2030_s22  ;;  %p1607_p7 = scmp.ge.s32.totalorder %s1913_s16, 1 }
  0x16   : > { %p429_p8 = scmp.lt.s32.totalorder %s1913_s16, 3 }
  0x18   : > { %p430_p9 = pnand %p1607_p7, %p429_p8 }
  0x19   : > { %p483_p10 = scmp.lt.s32.totalorder (!%p430_p9), %s2015_s17, 1  ;;  %s2345_s0 = sld [smem:[#allocation15_spill]] (!%p430_p9) }
  0x1a   : > { %433 = sbr.rel (%p430_p9) target bundleno = 1152 (0x480), region = 72  ;;  %s2346_s1 = sld [smem:[#allocation16_spill]] (!%p430_p9) }
  0x1b   : > { %s2347_s4 = sld [smem:[#allocation19_spill]] (!%p430_p9)  ;;  %s1918_s28 = smov (!%p430_p9), 64  }
  0x1c   : > { %s2348_s2 = sld [smem:[#allocation17_spill]] (!%p430_p9)  ;;  %s2267_s21 = sand.u32 (!%p430_p9), 1, %s1905_s30  }
  0x1d   : > { %s2349_s3 = sld [smem:[#allocation18_spill]] (!%p430_p9)  ;;  %s1471_s20 = scalar_lea.sflag (!%p430_p9), [#allocation11], %s2267_s21 }
  0x1e   : > { %s2350_s7 = sld [smem:[#allocation22_spill]] (!%p430_p9) }
  0x1f   : > { %s484_s25 = scalar_select %p483_p10, %s2015_s17, 1  ;;  %vm495_vm0 = vcmask 261120   ;;  %v1915_v4 = vmov 32.0   ;;  %vm569_vm5 = vcmask 518144   ;;  %v1916_v34 = vmov 0.0  }
  0x20   : > { %1767 = vrcp.f32 %v1915_v4  ;;  %570 = vst.msk [vmem:[#allocation2] sm:$0x7] %vm569_vm5, %v1916_v34  ;;  %vm571_vm6 = vcmask 523264   ;;  %s2351_s5 = sld [smem:[#allocation20_spill]]  ;;  %v720_v59 = vlaneseq  ;;  %vm677_vm11 = vcmask 1040384  }
  0x21   : > { %s1610_s26 = sshll.u32 %s484_s25, 3  ;;  %v1665_v16 = vld [vmem:[%s2347_s4 + $0x8] sm:$0xff]  ;;  %v1664_v17 = vld [vmem:[%s2347_s4] sm:$0xff]  ;;  %s2352_s6 = sld [smem:[#allocation21_spill]]  ;;  %vm673_vm12 = vcmask 15360   ;;  %vm823_vm13 = vcmask 7168  }
  0x22   : > { %s486_s18 = scalar_lea.vmem %s2345_s0, %s1610_s26  ;;  %s490_s22 = scalar_lea.vmem %s2346_s1, %s1610_s26  ;;  %562 = vmatpush.bf16.msra.mxu0 %v1665_v16  ;;  %v1742_v27 = vld [vmem:[%s2348_s2] ss:$0 sm:$0xff]  ;;  %v721_v60 = vshrl.u32 %v720_v59, 7  ;;  %vm1003_vm5 = vcmask 516096  }
  0x23   : > { %v492_v0 = vld [vmem:[%s490_s22] sm:$0xff]  ;;  %s1660_s0 = sshll.u32 %s2015_s17, 3  ;;  %s1608_s1 = sshll.u32 %s2267_s21, 3 }
  0x24   : > { %v493_v1 = vld [vmem:[%s486_s18] sm:$0xff]  ;;  %v1669_v35 = vld [vmem:[%s2350_s7 + $0x18] sm:$0xff]  ;;  %v1668_v36 = vld [vmem:[%s2350_s7 + $0x10] sm:$0xff]  ;;  %v722_v61 = vadd.s32 2, %v721_v60  ;;  %s482_s22 = scalar_lea.vmem [#allocation10], %s1608_s1  ;;  %s1495_s27 = scalar_lea.hbm %s2333_s14, %s1660_s0 }
  0x25   : > { %v2050_v2 = vadd.f32 %v493_v1, %v492_v0  ;;  %v1743_v30 = vld [vmem:[%s2349_s3] ss:$0 sm:$0xff]  ;;  %658 = vmatpush.bf16.msra.mxu1 %v1669_v35  ;;  %v1667_v38 = vld [vmem:[%s2350_s7 + $0x8] sm:$0xff]  ;;  %s1499_s18 = sshll.u32 %s1495_s27, 4  ;;  %s1500_s18 = int_to_ptr.hbm [resolvable:$true] %s1499_s18 }
  0x26   : > { %v1768_v5 = vpop.eup %1767  ;;  %563 = vmatpush.bf16.msra.mxu0 %v1664_v17  ;;  %v1744_v39 = vld [vmem:[%s2351_s5] ss:$0 sm:$0xff]  ;;  %v1745_v40 = vld [vmem:[%s2351_s5 + $0x1] ss:$0 sm:$0xff]  ;;  %v1746_v42 = vld [vmem:[%s2351_s5 + $0x2] ss:$0 sm:$0xff]  ;;  %1726 = vset.pattern.permute.xlu0 %v722_v61 }
  0x27   : > { %v497_v3 = vsel %vm495_vm0, %v2050_v2, 0.0  ;;  %v501_v6 = vmul.f32 32.0, %v1768_v5  ;;  %vm505_vm1 = vweird.f32 %v1768_v5  ;;  %v1666_v41 = vld [vmem:[%s2350_s7] sm:$0xff]  ;;  %1724 = vset.pattern.permute.xlu2 %v722_v61  ;;  %1722 = vset.pattern.permute.xlu1 %v722_v61  ;;  %496 = vst.msk [vmem:[%s482_s22] sm:$0xff] %vm495_vm0, %v2050_v2  ;;  %s1833_s2 = sshra.s32 %s1500_s18, 4  ;;  %s1834_s2 = int_to_ptr.hbm [resolvable:$true] %s1833_s2 }
  0x28   : > { %498 = vadd.xlane.f32.xlu0 %v497_v3  ;;  %v1747_v49 = vld [vmem:[%s2351_s5 + $0x3] ss:$0 sm:$0xff]  ;;  %v1748_v55 = vld [vmem:[%s2352_s6] ss:$0 sm:$0xff]  ;;  %s1835_s3 = scalar_lea.hbm %s1834_s2, 8  ;;  %s1839_s5 = scalar_lea.hbm %s2333_s14, 16 }
  0x29   : > { %v502_v7 = vsub.f32 1.0, %v501_v6  ;;  %659 = vmatpush.bf16.msra.mxu1 %v1668_v36  ;;  %v1749_v36 = vld [vmem:[%s2328_s9] ss:$0 sm:$0xff]  ;;  %p1836_p11 = scmp.ne.s32.totalorder %s1834_s2, %s1835_s3  ;;  %p1840_p0 = scmp.lt.s32.totalorder %s1834_s2, %s2333_s14 }
  0x2a   : > { %p1841_p1 = scmp.lt.s32.totalorder %s1839_s5, %s1835_s3 }
  0x2b   : > { %v503_v8 = vmul.f32 %v1768_v5, %v502_v7  ;;  %p1837_p12 = pnand %p1836_p11, %p2032_p5 }
  0x2c   : > { %p1842_p2 = por %p1841_p1, %p1840_p0 }
  0x2d   : > { %v504_v9 = vadd.f32 %v1768_v5, %v503_v8  ;;  %660 = vmatpush.bf16.msra.mxu1 %v1667_v38  ;;  %p1838_p13 = pneg %p1837_p12 }
  0x2f   : > { %v506_v10 = vsel %vm505_vm1, %v1768_v5, %v504_v9  ;;  %p1843_p3 = pnand %p1842_p2, %p1838_p13 }
  0x31   : > { %661 = vmatpush.bf16.msra.mxu1 %v1666_v41 }
  0x9b   : > { %v499_v11 = vpop.xlane.xlu0 %498 }
  0x9c   : > { %v507_v12 = vmul.f32 %v506_v10, %v499_v11 }
  0x9e   : > { %v508_v13 = vsub.f32 %v2050_v2, %v507_v12 }
  0xa0   : > { %v509_v14 = vmul.f32 %v508_v13, %v508_v13 }
  0xa2   : > { %v510_v15 = vsel %vm495_vm0, %v509_v14, 0.0 }
  0xa3   : > { %511 = vadd.xlane.f32.xlu0 %v510_v15 }
 0x116   : > { %v512_v18 = vpop.xlane.xlu0 %511 }
 0x117   : > { %v513_v19 = vmul.f32 %v512_v18, %v506_v10 }
 0x119   : > { %v514_v20 = vadd.f32 1e-05, %v513_v19 }
 0x11b   : > { %1769 = vrsqrt.f32 %v514_v20  ;;  %vm521_vm3 = vweird.f32 %v514_v20 }
 0x121   : > { %v1770_v21 = vpop.eup %1769 }
 0x122   : > { %v516_v22 = vmul.f32 %v1770_v21, %v514_v20  ;;  %vm522_vm2 = vweird.f32 %v1770_v21  ;;  %v728_v20 = vadd.s32 10, %v721_v60 }
 0x123   : > { %vm523_vm4 = vmor %vm521_vm3, %vm522_vm2 }
 0x124   : > { %v517_v23 = vmul.f32 %v1770_v21, %v516_v22 }
 0x126   : > { %v518_v24 = vmul.f32 0.5, %v517_v23  ;;  %v842_v23 = vadd.s32 18, %v721_v60 }
 0x128   : > { %v519_v25 = vsub.f32 1.5, %v518_v24 }
 0x12a   : > { %v520_v26 = vmul.f32 %v1770_v21, %v519_v25  ;;  %v848_v25 = vadd.s32 26, %v721_v60 }
 0x12c   : > { %v524_v28 = vsel %vm523_vm4, %v1770_v21, %v520_v26 }
 0x12d   : > { %v525_v29 = vmul.f32 %v524_v28, %v508_v13  ;;  %v668_v13 = vld [vmem:[%s2327_s8] sm:$0x1] }
 0x12e   : > { %v679_v14 = vsel %vm677_vm11, %v668_v13, 0 }
 0x12f   : > { %v530_v31 = vmul.f32 %v1742_v27, %v525_v29  ;;  %688 = vmatpush.bf16.msra.mxu2 %v679_v14  ;;  %v1917_v29 = vmov 0  }
 0x131   : > { %v535_v32 = vadd.f32 %v1743_v30, %v530_v31 }
 0x133   : > { %v536_v33 = vpack.c.bf16 %v535_v32, %v535_v32 }
 0x135   : > { %1620 = vmatmul.msk.bf16.vlgmr.msra.gmra.mxu0 %vm495_vm0, %v536_v33 }
 0x1b2   : > { %v2075_v37 = vpop.f32.mrf.mxu0 }
 0x1b3   : > { %572 = vst.msk [vmem:[#allocation2 + $0x3] sm:$0xff] %vm571_vm6, %v2075_v37 }
 0x1ba   : > { %v567_v43 = vpop.f32.mrf.mxu0  ;;  %v573_v44 = vld [vmem:[#allocation2] sm:$0xff] }
 0x1bb   : > { %v578_v45 = vld [vmem:[#allocation2 + $0x1] sm:$0xff]  ;;  %v576_v47 = vmul.f32 %v1744_v39, %v573_v44 }
 0x1bc   : > { %v583_v46 = vld [vmem:[#allocation2 + $0x2] sm:$0xff]  ;;  %v581_v48 = vmul.f32 %v1745_v40, %v578_v45 }
 0x1bd   : > { %v588_v50 = vld [vmem:[#allocation2 + $0x3] sm:$0xff]  ;;  %v586_v52 = vmul.f32 %v1746_v42, %v583_v46 }
 0x1be   : > { %v582_v51 = vadd.f32 %v581_v48, %v576_v47  ;;  %v591_v54 = vmul.f32 %v1747_v49, %v588_v50 }
 0x1c0   : > { %v587_v53 = vadd.f32 %v586_v52, %v582_v51 }
 0x1c2   : > { %v592_v56 = vadd.f32 %v591_v54, %v587_v53 }
 0x1c4   : > { %v597_v57 = vadd.f32 %v1748_v55, %v592_v56 }
 0x1c6   : > { %v1621_v58 = vmul.f32 -1.442695, %v597_v57 }
 0x1c8   : > { %1771 = vpow2.f32 %v1621_v58 }
 0x1ce   : > { %v1772_v62 = vpop.eup %1771 }
 0x1cf   : > { %v601_v63 = vadd.f32 1.0, %v1772_v62 }
 0x1d1   : > { %1773 = vrcp.f32 %v601_v63  ;;  %v613_v4 = vand.u32 2147483648, %v601_v63  ;;  %v611_v6 = vand.u32 2147483647, %v601_v63  ;;  %vm607_vm8 = vweird.f32 %v601_v63 }
 0x1d3   : > { %v614_v8 = vor.u32 1.1754944e-38, %v613_v4  ;;  %vm612_vm10 = vcmp.eq.f32.partialorder %v611_v6, 8.507059e+37 }
 0x1d7   : > { %v1774_v0 = vpop.eup %1773 }
 0x1d8   : > { %v603_v1 = vmul.f32 %v1774_v0, %v601_v63  ;;  %vm608_vm7 = vweird.f32 %v1774_v0 }
 0x1d9   : > { %vm609_vm9 = vmor %vm607_vm8, %vm608_vm7 }
 0x1da   : > { %v604_v3 = vsub.f32 1.0, %v603_v1 }
 0x1dc   : > { %v605_v5 = vmul.f32 %v1774_v0, %v604_v3 }
 0x1de   : > { %v606_v7 = vadd.f32 %v1774_v0, %v605_v5 }
 0x1e0   : > { %v610_v9 = vsel %vm609_vm9, %v1774_v0, %v606_v7 }
 0x1e1   : > { %v615_v10 = vsel %vm612_vm10, %v614_v8, %v610_v9 }
 0x1e2   : > { %v2100_v11 = vmul.f32 %v615_v10, %v597_v57 }
 0x1e4   : > { %v618_v12 = vpack.c.bf16 %v2100_v11, %v2100_v11 }
 0x1e6   : > { %1638 = vmatmul.msk.bf16.vlgmr.msra.gmra.mxu1 %vm571_vm6, %v618_v12 }
 0x263   : > { %v663_v15 = vpop.f32.mrf.mxu1 }
 0x264   : > { %v745_v16 = vperm.slane %v663_v15, 2  ;;  %v732_v17 = vperm.slane %v663_v15, 1  ;;  %v719_v18 = vperm.slane %v663_v15, 0  ;;  %v667_v19 = vpack.c.bf16 %v663_v15, %v663_v15 }
 0x265   : > { %v2108_v22 = vperm.slane %v663_v15, 7  ;;  %v758_v24 = vperm.slane %v663_v15, 3  ;;  %v771_v26 = vperm.slane %v663_v15, 4  ;;  %v784_v27 = vperm.slane %v663_v15, 5 }
 0x266   : > { %750 = vperm.xlu0 %1726, %v745_v16   ;;  %737 = vperm.xlu2 %1724, %v732_v17   ;;  %v797_v28 = vperm.slane %v663_v15, 6 }
 0x267   : > { %724 = vperm.xlu1 %1722, %v719_v18   ;;  %1639 = vmatmul.msk.bf16.vlgmr.msra.gmra.mxu2 %vm673_vm12, %v667_v19 }
 0x26b   : > { %v665_v21 = vpop.f32.mrf.mxu1 }
 0x26e   : > { %1728 = vset.pattern.permute.xlu0 %v728_v20  ;;  %1725 = vset.pattern.permute.xlu2 %v728_v20 }
 0x26f   : > { %1723 = vset.pattern.permute.xlu1 %v728_v20 }
 0x276   : > { %821 = vperm.xlu0 %1728, %v2108_v22   ;;  %743 = vperm.xlu2 %1725, %v732_v17  }
 0x277   : > { %730 = vperm.xlu1 %1723, %v719_v18  }
 0x27e   : > { %1731 = vset.pattern.permute.xlu0 %v842_v23  ;;  %1727 = vset.pattern.permute.xlu2 %v722_v61 }
 0x27f   : > { %756 = vperm.xlu1 %1723, %v745_v16  }
 0x286   : > { %868 = vperm.xlu0 %1731, %v745_v16   ;;  %763 = vperm.xlu2 %1727, %v758_v24  }
 0x287   : > { %769 = vperm.xlu1 %1723, %v758_v24  }
 0x28e   : > { %1734 = vset.pattern.permute.xlu0 %v848_v25  ;;  %776 = vperm.xlu2 %1727, %v771_v26  }
 0x28f   : > { %782 = vperm.xlu1 %1723, %v771_v26  }
 0x296   : > { %898 = vperm.xlu0 %1734, %v771_v26   ;;  %789 = vperm.xlu2 %1727, %v784_v27  }
 0x297   : > { %795 = vperm.xlu1 %1723, %v784_v27  }
 0x29e   : > { %1737 = vset.pattern.permute.xlu0 %v842_v23  ;;  %802 = vperm.xlu2 %1727, %v797_v28  }
 0x29f   : > { %808 = vperm.xlu1 %1723, %v797_v28  }
 0x2a6   : > { %928 = vperm.xlu0 %1737, %v2108_v22   ;;  %815 = vperm.xlu2 %1727, %v2108_v22  }
 0x2a7   : > { %1729 = vset.pattern.permute.xlu1 %v842_v23 }
 0x2ae   : > { %1730 = vset.pattern.permute.xlu2 %v848_v25  ;;  %1741 = vset.pattern.permute.xlu0 %v1917_v29 }
 0x2af   : > { %844 = vperm.xlu1 %1729, %v719_v18  }
 0x2b6   : > { %850 = vperm.xlu2 %1730, %v719_v18  }
 0x2b7   : > { %856 = vperm.xlu1 %1729, %v732_v17  }
 0x2be   : > { %862 = vperm.xlu2 %1730, %v732_v17  }
 0x2bf   : > { %1732 = vset.pattern.permute.xlu1 %v848_v25 }
 0x2c0   : > { %v738_v30 = vpop.permute.xlu2 %737 }
 0x2c1   : > { %826 = vst.msk [vmem:[#allocation5 + $0x10] sm:$0xff] %vm823_vm13, %v738_v30 }
 0x2c6   : > { %1733 = vset.pattern.permute.xlu2 %v842_v23 }
 0x2c7   : > { %874 = vperm.xlu1 %1732, %v745_v16  }
 0x2c8   : > { %v1017_v58 = vld [vmem:[#allocation5 + $0x10] sm:$0xff] }
 0x2ce   : > { %880 = vperm.xlu2 %1733, %v758_v24  }
 0x2cf   : > { %886 = vperm.xlu1 %1732, %v758_v24  }
 0x2d0   : > { %v744_v31 = vpop.permute.xlu2 %743 }
 0x2d1   : > { %827 = vst.msk [vmem:[#allocation5 + $0x18] sm:$0xff] %vm823_vm13, %v744_v31 }
 0x2d6   : > { %892 = vperm.xlu2 %1733, %v771_v26  }
 0x2d7   : > { %1735 = vset.pattern.permute.xlu1 %v842_v23 }
 0x2d8   : > { %v751_v32 = vpop.permute.xlu0 %750  ;;  %v1018_v33 = vld [vmem:[#allocation5 + $0x18] sm:$0xff] }
 0x2d9   : > { %828 = vst.msk [vmem:[#allocation5 + $0x20] sm:$0xff] %vm823_vm13, %v751_v32  ;;  %v725_v34 = vpop.permute.xlu1 %724  ;;  %1027 = vperm.xlu0 %1741, %v1018_v33   ;;  %v1640_v32 = vmul.f32 -1.442695, %v2075_v37 }
 0x2da   : > { %824 = vst.msk [vmem:[#allocation5] sm:$0xff] %vm823_vm13, %v725_v34 }
 0x2de   : > { %1736 = vset.pattern.permute.xlu2 %v848_v25 }
 0x2df   : > { %904 = vperm.xlu1 %1735, %v784_v27  }
 0x2e0   : > { %v764_v35 = vpop.permute.xlu2 %763  ;;  %v1071_v6 = vld [vmem:[#allocation5 + $0x20] sm:$0xff] }
 0x2e1   : > { %830 = vst.msk [vmem:[#allocation5 + $0x30] sm:$0xff] %vm823_vm13, %v764_v35  ;;  %v963_v49 = vld [vmem:[#allocation5] sm:$0xff] }
 0x2e6   : > { %910 = vperm.xlu2 %1736, %v784_v27  }
 0x2e7   : > { %916 = vperm.xlu1 %1735, %v797_v28  }
 0x2e8   : > { %v822_v38 = vpop.permute.xlu0 %821  ;;  %v777_v39 = vpop.permute.xlu2 %776  ;;  %v1125_v10 = vld [vmem:[#allocation5 + $0x30] sm:$0xff] }
 0x2e9   : > { %839 = vst.msk [vmem:[#allocation5 + $0x78] sm:$0xff] %vm823_vm13, %v822_v38  ;;  %v731_v40 = vpop.permute.xlu1 %730 }
 0x2ea   : > { %832 = vst.msk [vmem:[#allocation5 + $0x40] sm:$0xff] %vm823_vm13, %v777_v39  ;;  %v690_v41 = vpop.f32.mrf.mxu2 }
 0x2eb   : > { %825 = vst.msk [vmem:[#allocation5 + $0x8] sm:$0xff] %vm823_vm13, %v731_v40  ;;  %v691_v42 = vadd.f32 %v1749_v36, %v690_v41 }
 0x2ed   : > { %v695_v43 = vmin.f32 %v691_v42, 20.0  ;;  %vm694_vm15 = vcmp.gt.f32.partialorder %v691_v42, 20.0 }
 0x2ee   : > { %922 = vperm.xlu2 %1736, %v797_v28  }
 0x2ef   : > { %v696_v44 = vmul.f32 1.442695, %v695_v43  ;;  %1738 = vset.pattern.permute.xlu1 %v848_v25 }
 0x2f0   : > { %v790_v45 = vpop.permute.xlu2 %789  ;;  %v1342_v24 = vld [vmem:[#allocation5 + $0x78] sm:$0xff] }
 0x2f1   : > { %1775 = vpow2.f32 %v696_v44  ;;  %834 = vst.msk [vmem:[#allocation5 + $0x50] sm:$0xff] %vm823_vm13, %v790_v45  ;;  %v757_v46 = vpop.permute.xlu1 %756  ;;  %v1179_v47 = vld [vmem:[#allocation5 + $0x40] sm:$0xff] }
 0x2f2   : > { %829 = vst.msk [vmem:[#allocation5 + $0x28] sm:$0xff] %vm823_vm13, %v757_v46  ;;  %1184 = vperm.xlu0 %1741, %v1179_v47   ;;  %v692_v48 = vpop.f32.mrf.mxu2  ;;  %v964_v59 = vld [vmem:[#allocation5 + $0x8] sm:$0xff] }
 0x2f6   : > { %1739 = vset.pattern.permute.xlu2 %v1917_v29 }
 0x2f7   : > { %v1776_v50 = vpop.eup %1775  ;;  %934 = vperm.xlu1 %1738, %v2108_v22   ;;  %968 = vperm.xlu2 %1739, %v963_v49  }
 0x2f8   : > { %v698_v51 = vadd.f32 1.0, %v1776_v50  ;;  %v869_v52 = vpop.permute.xlu0 %868  ;;  %v803_v53 = vpop.permute.xlu2 %802  ;;  %v701_v54 = vmul.f32 -0.5, %v1776_v50  ;;  %v704_v57 = vand.u32 2147483647, %v1776_v50  ;;  %v1233_v15 = vld [vmem:[#allocation5 + $0x50] sm:$0xff] }
 0x2f9   : > { %940 = vst.msk [vmem:[#allocation6 + $0x20] sm:$0xff] %vm823_vm13, %v869_v52  ;;  %v770_v55 = vpop.permute.xlu1 %769  ;;  %v1072_v5 = vld [vmem:[#allocation5 + $0x28] sm:$0xff] }
 0x2fa   : > { %1777 = vlog2.f32 %v698_v51  ;;  %836 = vst.msk [vmem:[#allocation5 + $0x60] sm:$0xff] %vm823_vm13, %v803_v53  ;;  %v702_v56 = vadd.f32 1.0, %v701_v54  ;;  %vm705_vm14 = vcmp.lt.f32.partialorder %v704_v57, 0.0004427343 }
 0x2fb   : > { %831 = vst.msk [vmem:[#allocation5 + $0x38] sm:$0xff] %vm823_vm13, %v770_v55  ;;  %1779 = vpow2.f32 %v1640_v32 }
 0x2fc   : > { %v703_v63 = vmul.f32 %v1776_v50, %v702_v56 }
 0x2ff   : > { %1740 = vset.pattern.permute.xlu1 %v1917_v29  ;;  %1022 = vperm.xlu2 %1739, %v1017_v58  }
 0x300   : > { %v1778_v60 = vpop.eup %1777  ;;  %973 = vperm.xlu1 %1740, %v964_v59   ;;  %v816_v61 = vpop.permute.xlu2 %815  ;;  %v1089_v27 = vld [vmem:[#allocation6 + $0x20] sm:$0xff] }
 0x301   : > { %v700_v62 = vmul.f32 0.6931472, %v1778_v60  ;;  %838 = vst.msk [vmem:[#allocation5 + $0x70] sm:$0xff] %vm823_vm13, %v816_v61  ;;  %v783_v0 = vpop.permute.xlu1 %782  ;;  %v1287_v21 = vld [vmem:[#allocation5 + $0x60] sm:$0xff]  ;;  %v1780_v40 = vpop.eup %1779 }
 0x302   : > { %833 = vst.msk [vmem:[#allocation5 + $0x48] sm:$0xff] %vm823_vm13, %v783_v0  ;;  %v1126_v9 = vld [vmem:[#allocation5 + $0x38] sm:$0xff]  ;;  %v1393_v41 = vadd.f32 1.0, %v1780_v40 }
 0x303   : > { %v706_v1 = vsel %vm705_vm14, %v703_v63, %v700_v62 }
 0x304   : > { %v707_v3 = vsel %vm694_vm15, %v691_v42, %v706_v1  ;;  %1781 = vrcp.f32 %v1393_v41  ;;  %v1405_v56 = vand.u32 2147483648, %v1393_v41  ;;  %vm1399_vm2 = vweird.f32 %v1393_v41 }
 0x305   : > { %716 = vst.msk [vmem:[#allocation3] sm:$0xff] %vm571_vm6, %v707_v3  ;;  %v717_v4 = vmul.f32 %v707_v3, %v2100_v11  ;;  %v1403_v57 = vand.u32 2147483647, %v1393_v41  ;;  %v708_v3 = vld [vmem:[%s2329_s10] sm:$0xff] }
 0x306   : > { %v1406_v62 = vor.u32 1.1754944e-38, %v1405_v56 }
 0x307   : > { %718 = vst.msk [vmem:[#allocation4] sm:$0xff] %vm571_vm6, %v717_v4  ;;  %1081 = vperm.xlu2 %1739, %v1072_v5   ;;  %vm1404_vm4 = vcmp.eq.f32.partialorder %v1403_v57, 8.507059e+37  ;;  %v709_v5 = vld [vmem:[%s2329_s10 + $0x8] sm:$0xff] }
 0x308   : > { %1076 = vperm.xlu1 %1740, %v1071_v6   ;;  %v899_v7 = vpop.permute.xlu0 %898  ;;  %v1341_v19 = vld [vmem:[#allocation5 + $0x70] sm:$0xff]  ;;  %v710_v6 = vmul.f32 1.442695, %v708_v3 }
 0x309   : > { %945 = vst.msk [vmem:[#allocation6 + $0x48] sm:$0xff] %vm823_vm13, %v899_v7  ;;  %v796_v8 = vpop.permute.xlu1 %795  ;;  %v1180_v16 = vld [vmem:[#allocation5 + $0x48] sm:$0xff]  ;;  %v712_v7 = vmul.f32 1.442695, %v709_v5 }
 0x30a   : > { %835 = vst.msk [vmem:[#allocation5 + $0x58] sm:$0xff] %vm823_vm13, %v796_v8  ;;  %v1782_v45 = vpop.eup %1781  ;;  %1783 = vpow2.f32 %v710_v6 }
 0x30b   : > { %v1395_v48 = vmul.f32 %v1782_v45, %v1393_v41  ;;  %vm1400_vm1 = vweird.f32 %v1782_v45  ;;  %1785 = vpow2.f32 %v712_v7 }
 0x30c   : > { %vm1401_vm3 = vmor %vm1399_vm2, %vm1400_vm1  ;;  %v1761_v56 = vld [vmem:[#allocation3 + $0x3] ss:$0 sm:$0xff] }
 0x30d   : > { %v1396_v49 = vsub.f32 1.0, %v1395_v48 }
 0x30f   : > { %1135 = vperm.xlu2 %1739, %v1126_v9   ;;  %v1397_v54 = vmul.f32 %v1782_v45, %v1396_v49 }
 0x310   : > { %1130 = vperm.xlu1 %1740, %v1125_v10   ;;  %v851_v12 = vpop.permute.xlu2 %850  ;;  %v1198_v38 = vld [vmem:[#allocation6 + $0x48] sm:$0xff] }
 0x311   : > { %937 = vst.msk [vmem:[#allocation6 + $0x8] sm:$0xff] %vm823_vm13, %v851_v12  ;;  %v809_v13 = vpop.permute.xlu1 %808  ;;  %v1234_v14 = vld [vmem:[#allocation5 + $0x58] sm:$0xff]  ;;  %v1398_v55 = vadd.f32 %v1782_v45, %v1397_v54  ;;  %v1784_v12 = vpop.eup %1783 }
 0x312   : > { %837 = vst.msk [vmem:[#allocation5 + $0x68] sm:$0xff] %vm823_vm13, %v809_v13  ;;  %1243 = vperm.xlu0 %1741, %v1234_v14   ;;  %v1786_v13 = vpop.eup %1785  ;;  %v2171_v14 = vsub.f32 0.0, %v1784_v12  ;;  %v1762_v12 = vld [vmem:[#allocation3 + $0x4] ss:$0 sm:$0xff] }
 0x313   : > { %v1402_v61 = vsel %vm1401_vm3, %v1782_v45, %v1398_v55 }
 0x314   : > { %v1407_v63 = vsel %vm1404_vm4, %v1406_v62, %v1402_v61  ;;  %v1115_v5 = vmul.f32 %v1761_v56, %v2171_v14 }
 0x315   : > { %v1409_v0 = vmul.f32 %v1407_v63, %v2075_v37 }
 0x317   : > { %1238 = vperm.xlu2 %1739, %v1233_v15   ;;  %v1751_v15 = vld [vmem:[#allocation3] ss:$0 sm:$0xff] }
 0x318   : > { %1189 = vperm.xlu1 %1740, %v1180_v16   ;;  %v929_v17 = vpop.permute.xlu0 %928  ;;  %v863_v18 = vpop.permute.xlu2 %862  ;;  %v981_v23 = vld [vmem:[#allocation6 + $0x8] sm:$0xff] }
 0x319   : > { %950 = vst.msk [vmem:[#allocation6 + $0x70] sm:$0xff] %vm823_vm13, %v929_v17  ;;  %v1288_v20 = vld [vmem:[#allocation5 + $0x68] sm:$0xff] }
 0x31a   : > { %939 = vst.msk [vmem:[#allocation6 + $0x18] sm:$0xff] %vm823_vm13, %v863_v18  ;;  %1346 = vperm.xlu0 %1741, %v1341_v19   ;;  %v2177_v18 = vsub.f32 0.0, %v1786_v13  ;;  %v954_v19 = vmul.f32 %v1751_v15, %v2171_v14 }
 0x31f   : > { %1297 = vperm.xlu2 %1739, %v1288_v20  }
 0x320   : > { %1292 = vperm.xlu1 %1740, %v1287_v21   ;;  %v1359_v52 = vld [vmem:[#allocation6 + $0x70] sm:$0xff]  ;;  %v955_v21 = vmul.f32 %v1751_v15, %v2177_v18 }
 0x321   : > { %v845_v22 = vpop.permute.xlu1 %844  ;;  %v1036_v30 = vld [vmem:[#allocation6 + $0x18] sm:$0xff] }
 0x322   : > { %936 = vst.msk [vmem:[#allocation6] sm:$0xff] %vm823_vm13, %v845_v22  ;;  %989 = vperm.xlu0 %1741, %v981_v23   ;;  %v956_v22 = vmul.f32 1.442695, %v954_v19 }
 0x324   : > { %1787 = vpow2.f32 %v956_v22  ;;  %v1117_v22 = vmul.f32 1.442695, %v1115_v5 }
 0x328   : > { %1351 = vperm.xlu1 %1740, %v1342_v24   ;;  %v881_v25 = vpop.permute.xlu2 %880  ;;  %v958_v24 = vmul.f32 1.442695, %v955_v21 }
 0x329   : > { %942 = vst.msk [vmem:[#allocation6 + $0x30] sm:$0xff] %vm823_vm13, %v881_v25  ;;  %v857_v26 = vpop.permute.xlu1 %856  ;;  %v980_v28 = vld [vmem:[#allocation6] sm:$0xff] }
 0x32a   : > { %938 = vst.msk [vmem:[#allocation6 + $0x10] sm:$0xff] %vm823_vm13, %v857_v26  ;;  %1093 = vperm.xlu0 %1741, %v1089_v27   ;;  %984 = vperm.xlu2 %1739, %v980_v28   ;;  %v1753_v26 = vld [vmem:[#allocation3 + $0x1] ss:$0 sm:$0xff]  ;;  %1789 = vpow2.f32 %v958_v24 }
 0x32b   : > { %v1008_v32 = vmul.f32 %v1753_v26, %v2177_v18 }
 0x32d   : > { %v1011_v40 = vmul.f32 1.442695, %v1008_v32 }
 0x32f   : > { %1791 = vpow2.f32 %v1011_v40 }
 0x330   : > { %v893_v29 = vpop.permute.xlu2 %892  ;;  %v1143_v34 = vld [vmem:[#allocation6 + $0x30] sm:$0xff] }
 0x331   : > { %944 = vst.msk [vmem:[#allocation6 + $0x40] sm:$0xff] %vm823_vm13, %v893_v29  ;;  %v1035_v31 = vld [vmem:[#allocation6 + $0x10] sm:$0xff]  ;;  %v1752_v29 = vld [vmem:[#allocation4] ss:$0 sm:$0xff] }
 0x332   : > { %1044 = vperm.xlu2 %1739, %v1036_v30   ;;  %1039 = vperm.xlu1 %1740, %v1035_v31   ;;  %v1788_v30 = vpop.eup %1787 }
 0x338   : > { %v1197_v43 = vld [vmem:[#allocation6 + $0x40] sm:$0xff] }
 0x339   : > { %v875_v33 = vpop.permute.xlu1 %874 }
 0x33a   : > { %941 = vst.msk [vmem:[#allocation6 + $0x28] sm:$0xff] %vm823_vm13, %v875_v33  ;;  %1147 = vperm.xlu2 %1739, %v1143_v34   ;;  %v1790_v34 = vpop.eup %1789 }
 0x33b   : > { %v1792_v57 = vpop.eup %1791 }
 0x340   : > { %v911_v35 = vpop.permute.xlu2 %910 }
 0x341   : > { %947 = vst.msk [vmem:[#allocation6 + $0x58] sm:$0xff] %vm823_vm13, %v911_v35  ;;  %v887_v36 = vpop.permute.xlu1 %886  ;;  %v1090_v39 = vld [vmem:[#allocation6 + $0x28] sm:$0xff]  ;;  %v960_v35 = vmul.f32 0.0, %v1788_v30 }
 0x342   : > { %943 = vst.msk [vmem:[#allocation6 + $0x38] sm:$0xff] %vm823_vm13, %v887_v36  ;;  %1206 = vperm.xlu2 %1739, %v1198_v38   ;;  %1098 = vperm.xlu1 %1740, %v1090_v39   ;;  %v1759_v38 = vld [vmem:[#allocation3 + $0x2] ss:$0 sm:$0xff] }
 0x348   : > { %v923_v42 = vpop.permute.xlu2 %922  ;;  %v1252_v47 = vld [vmem:[#allocation6 + $0x58] sm:$0xff] }
 0x349   : > { %949 = vst.msk [vmem:[#allocation6 + $0x68] sm:$0xff] %vm823_vm13, %v923_v42  ;;  %v1144_v44 = vld [vmem:[#allocation6 + $0x38] sm:$0xff]  ;;  %v1007_v42 = vmul.f32 %v1753_v26, %v2171_v14 }
 0x34a   : > { %1201 = vperm.xlu1 %1740, %v1197_v43   ;;  %1152 = vperm.xlu0 %1741, %v1144_v44   ;;  %v961_v43 = vmul.f32 0.0, %v1790_v34 }
 0x34b   : > { %v1028_v9 = vpop.permute.xlu0 %1027  ;;  %v1009_v49 = vmul.f32 1.442695, %v1007_v42  ;;  %v1763_v42 = vld [vmem:[#allocation3 + $0x5] ss:$0 sm:$0xff] }
 0x34d   : > { %1793 = vpow2.f32 %v1009_v49 }
 0x350   : > { %v1306_v59 = vld [vmem:[#allocation6 + $0x68] sm:$0xff] }
 0x351   : > { %v905_v46 = vpop.permute.xlu1 %904  ;;  %v2154_v50 = vpop.permute.xlu2 %968 }
 0x352   : > { %946 = vst.msk [vmem:[#allocation6 + $0x50] sm:$0xff] %vm823_vm13, %v905_v46  ;;  %1260 = vperm.xlu1 %1740, %v1252_v47   ;;  %v976_v33 = vmul.f32 %v1752_v29, %v2154_v50  ;;  %v1062_v47 = vmul.f32 %v1759_v38, %v2177_v18 }
 0x354   : > { %v978_v41 = vadd.f32 %v976_v33, %v960_v35  ;;  %v1065_v54 = vmul.f32 1.442695, %v1062_v47  ;;  %v1169_v33 = vmul.f32 %v1762_v12, %v2171_v14  ;;  %v1170_v35 = vmul.f32 %v1762_v12, %v2177_v18  ;;  %v1756_v47 = vld [vmem:[#allocation4 + $0x3] ss:$0 sm:$0xff] }
 0x356   : > { %1795 = vpow2.f32 %v1065_v54  ;;  %v1173_v49 = vmul.f32 1.442695, %v1170_v35 }
 0x359   : > { %v917_v51 = vpop.permute.xlu1 %916  ;;  %v1251_v53 = vld [vmem:[#allocation6 + $0x50] sm:$0xff]  ;;  %v2157_v58 = vpop.permute.xlu2 %1022 }
 0x35a   : > { %948 = vst.msk [vmem:[#allocation6 + $0x60] sm:$0xff] %vm823_vm13, %v917_v51  ;;  %1363 = vperm.xlu1 %1740, %v1359_v52   ;;  %1255 = vperm.xlu0 %1741, %v1251_v53   ;;  %v1061_v51 = vmul.f32 %v1759_v38, %v2171_v14 }
 0x35c   : > { %v1063_v61 = vmul.f32 1.442695, %v1061_v51 }
 0x35e   : > { %1797 = vpow2.f32 %v1063_v61 }
 0x361   : > { %v1305_v60 = vld [vmem:[#allocation6 + $0x60] sm:$0xff]  ;;  %v2163_v4 = vpop.permute.xlu2 %1081 }
 0x362   : > { %1314 = vperm.xlu0 %1741, %v1306_v59   ;;  %1309 = vperm.xlu2 %1739, %v1305_v60   ;;  %v1750_v60 = vld [vmem:[#allocation4 + $0x1] ss:$0 sm:$0xff] }
 0x363   : > { %v1031_v3 = vmul.f32 %v1750_v60, %v1028_v9  ;;  %v1030_v6 = vmul.f32 %v1750_v60, %v2157_v58 }
 0x364   : > { %v2175_v17 = vpop.permute.xlu0 %1184 }
 0x369   : > { %v935_v1 = vpop.permute.xlu1 %934  ;;  %v2169_v10 = vpop.permute.xlu2 %1135 }
 0x36a   : > { %951 = vst.msk [vmem:[#allocation6 + $0x78] sm:$0xff] %vm823_vm13, %v935_v1  ;;  %1411 = vrot.lane.b32.xlu0 %v1409_v0, %s1918_s28  ;;  %v1116_v1 = vmul.f32 %v1761_v56, %v2177_v18  ;;  %v1223_v56 = vmul.f32 %v1763_v42, %v2171_v14  ;;  %v1139_v60 = vmul.f32 %v1756_v47, %v2169_v10  ;;  %s1497_s28 = sshll.u32 %s482_s22, 4  ;;  %s1498_s28 = int_to_ptr.vmem [resolvable:$true] %s1497_s28 }
 0x36c   : > { %v1119_v21 = vmul.f32 1.442695, %v1116_v1 }
 0x36e   : > { %1799 = vpow2.f32 %v1119_v21 }
 0x36f   : > { %1801 = vpow2.f32 %v1117_v22 }
 0x371   : > { %v1360_v8 = vld [vmem:[#allocation6 + $0x78] sm:$0xff]  ;;  %v2180_v20 = vpop.permute.xlu2 %1238 }
 0x372   : > { %1368 = vperm.xlu2 %1739, %v1360_v8   ;;  %v974_v37 = vpop.permute.xlu1 %973  ;;  %v1794_v8 = vpop.eup %1793 }
 0x373   : > { %v977_v36 = vmul.f32 %v1752_v29, %v974_v37  ;;  %v1013_v13 = vmul.f32 %v1794_v8, %v978_v41  ;;  %v1796_v24 = vpop.eup %1795  ;;  %v1754_v29 = vld [vmem:[#allocation4 + $0x2] ss:$0 sm:$0xff] }
 0x374   : > { %v1798_v38 = vpop.eup %1797 }
 0x375   : > { %v979_v45 = vadd.f32 %v977_v36, %v961_v43  ;;  %v1032_v26 = vadd.f32 %v1030_v6, %v1013_v13  ;;  %v1800_v51 = vpop.eup %1799  ;;  %v1225_v6 = vmul.f32 1.442695, %v1223_v56 }
 0x376   : > { %v1802_v54 = vpop.eup %1801 }
 0x377   : > { %v1014_v62 = vmul.f32 %v1792_v57, %v979_v45 }
 0x379   : > { %v2187_v27 = vpop.permute.xlu2 %1297  ;;  %v1033_v37 = vadd.f32 %v1031_v3, %v1014_v62  ;;  %v1755_v3 = vld [vmem:[#allocation4 + $0x4] ss:$0 sm:$0xff] }
 0x37a   : > { %v2173_v16 = vpop.permute.xlu1 %1076 }
 0x37b   : > { %v1068_v9 = vmul.f32 %v1796_v24, %v1033_v37  ;;  %v1084_v58 = vmul.f32 %v1754_v29, %v2173_v16 }
 0x382   : > { %v2183_v23 = vpop.permute.xlu1 %1130 }
 0x384   : > { %v2185_v25 = vpop.permute.xlu0 %1243  ;;  %v985_v39 = vpop.permute.xlu2 %984 }
 0x385   : > { %v992_v46 = vmul.f32 %v985_v39, %v978_v41  ;;  %v1085_v39 = vmul.f32 %v1754_v29, %v2163_v4  ;;  %v1067_v41 = vmul.f32 %v1798_v38, %v1032_v26 }
 0x387   : > { %v994_v52 = vsel %vm571_vm6, %v992_v46, 0.0  ;;  %v1171_v46 = vmul.f32 1.442695, %v1169_v33  ;;  %v1765_v33 = vld [vmem:[#allocation3 + $0x7] ss:$0 sm:$0xff] }
 0x389   : > { %1803 = vpow2.f32 %v1171_v46 }
 0x38a   : > { %v2189_v28 = vpop.permute.xlu1 %1189  ;;  %1805 = vpow2.f32 %v1173_v49 }
 0x38b   : > { %v1193_v12 = vmul.f32 %v1755_v3, %v2189_v28 }
 0x38c   : > { %v2191_v31 = vpop.permute.xlu0 %1346  ;;  %v1045_v15 = vpop.permute.xlu2 %1044 }
 0x38d   : > { %v1048_v32 = vmul.f32 %v1045_v15, %v1033_v37 }
 0x38f   : > { %v1050_v43 = vsel %vm571_vm6, %v1048_v32, 0.0  ;;  %v1804_v37 = vpop.eup %1803 }
 0x390   : > { %v1806_v13 = vpop.eup %1805 }
 0x392   : > { %v2196_v44 = vpop.permute.xlu1 %1292 }
 0x394   : > { %v990_v48 = vpop.permute.xlu0 %989  ;;  %v1148_v5 = vpop.permute.xlu2 %1147 }
 0x395   : > { %v993_v50 = vmul.f32 %v990_v48, %v979_v45  ;;  %v1087_v45 = vadd.f32 %v1085_v39, %v1068_v9  ;;  %v1086_v48 = vadd.f32 %v1084_v58, %v1067_v41  ;;  %v1757_v41 = vld [vmem:[#allocation4 + $0x5] ss:$0 sm:$0xff] }
 0x396   : > { %v1246_v49 = vmul.f32 %v1757_v41, %v2180_v20 }
 0x397   : > { %v995_v53 = vsel %vm571_vm6, %v993_v50, 0.0  ;;  %v1121_v57 = vmul.f32 %v1802_v54, %v1086_v48 }
 0x398   : > { %v996_v55 = vadd.f32 %v995_v53, %v994_v52  ;;  %v1138_v52 = vmul.f32 %v1756_v47, %v2183_v23  ;;  %v1224_v53 = vmul.f32 %v1763_v42, %v2177_v18  ;;  %v1247_v47 = vmul.f32 %v1757_v41, %v2185_v25 }
 0x39a   : > { %v997_v59 = vrot.slane %v996_v55, 4  ;;  %v2202_v0 = vpop.permute.xlu1 %1351  ;;  %v1140_v61 = vadd.f32 %v1138_v52, %v1121_v57  ;;  %v1227_v1 = vmul.f32 1.442695, %v1224_v53 }
 0x39c   : > { %v998_v63 = vadd.f32 %v997_v59, %v996_v55  ;;  %v1122_v55 = vmul.f32 %v1800_v51, %v1087_v45  ;;  %v1175_v15 = vmul.f32 %v1804_v37, %v1140_v61  ;;  %1807 = vpow2.f32 %v1227_v1  ;;  %v1207_v42 = vpop.permute.xlu2 %1206 }
 0x39d   : > { %1809 = vpow2.f32 %v1225_v6 }
 0x39e   : > { %v999_v7 = vrot.slane %v998_v63, 2  ;;  %v1141_v23 = vadd.f32 %v1139_v60, %v1122_v55 }
 0x3a0   : > { %v1000_v19 = vadd.f32 %v999_v7, %v998_v63  ;;  %v1764_v63 = vld [vmem:[#allocation3 + $0x6] ss:$0 sm:$0xff]  ;;  %v1094_v7 = vpop.permute.xlu0 %1093  ;;  %v1176_v22 = vmul.f32 %v1806_v13, %v1141_v23 }
 0x3a1   : > { %v1278_v21 = vmul.f32 %v1764_v63, %v2177_v18  ;;  %v1101_v10 = vmul.f32 %v1094_v7, %v1086_v48  ;;  %v1277_v24 = vmul.f32 %v1764_v63, %v2171_v14  ;;  %v1155_v48 = vmul.f32 %v1148_v5, %v1140_v61 }
 0x3a2   : > { %v1001_v30 = vrot.slane %v1000_v19, 1  ;;  %v1195_v32 = vadd.f32 %v1193_v12, %v1176_v22  ;;  %v1808_v38 = vpop.eup %1807 }
 0x3a3   : > { %v1281_v28 = vmul.f32 1.442695, %v1278_v21  ;;  %v1157_v25 = vsel %vm571_vm6, %v1155_v48, 0.0 }
 0x3a4   : > { %v1002_v34 = vadd.f32 %v1001_v30, %v1000_v19  ;;  %v1040_v36 = vpop.permute.xlu1 %1039 }
 0x3a5   : > { %v1047_v40 = vmul.f32 %v1040_v36, %v1032_v26  ;;  %v1192_v26 = vmul.f32 %v1755_v3, %v2175_v17  ;;  %v1279_v36 = vmul.f32 1.442695, %v1277_v24  ;;  %v1230_v17 = vmul.f32 %v1808_v38, %v1195_v32 }
 0x3a6   : > { %1004 = vst.msk [vmem:[#allocation7] sm:$0x1] %vm1003_vm5, %v1002_v34  ;;  %v1103_v34 = vsel %vm571_vm6, %v1101_v10, 0.0  ;;  %1811 = vpow2.f32 %v1281_v28  ;;  %v1760_v10 = vld [vmem:[#allocation4 + $0x7] ss:$0 sm:$0xff] }
 0x3a7   : > { %v1049_v16 = vsel %vm571_vm6, %v1047_v40, 0.0  ;;  %v1194_v58 = vadd.f32 %v1192_v26, %v1175_v15  ;;  %v1810_v40 = vpop.eup %1809  ;;  %1813 = vpow2.f32 %v1279_v36  ;;  %v1249_v55 = vadd.f32 %v1247_v47, %v1230_v17 }
 0x3a8   : > { %v1051_v50 = vadd.f32 %v1050_v43, %v1049_v16  ;;  %v1331_v43 = vmul.f32 %v1765_v33, %v2171_v14  ;;  %v1332_v16 = vmul.f32 %v1765_v33, %v2177_v18 }
 0x3aa   : > { %v1052_v4 = vrot.slane %v1051_v50, 4  ;;  %v1333_v56 = vmul.f32 1.442695, %v1331_v43  ;;  %v1335_v60 = vmul.f32 1.442695, %v1332_v16 }
 0x3ac   : > { %v1053_v59 = vadd.f32 %v1052_v4, %v1051_v50  ;;  %v1210_v50 = vmul.f32 %v1207_v42, %v1195_v32  ;;  %v1758_v4 = vld [vmem:[#allocation4 + $0x6] ss:$0 sm:$0xff]  ;;  %1815 = vpow2.f32 %v1333_v56  ;;  %v1355_v32 = vmul.f32 %v1760_v10, %v2202_v0 }
 0x3ad   : > { %v1300_v18 = vmul.f32 %v1758_v4, %v2196_v44  ;;  %1817 = vpow2.f32 %v1335_v60  ;;  %v1301_v44 = vmul.f32 %v1758_v4, %v2187_v27 }
 0x3ae   : > { %v1054_v62 = vrot.slane %v1053_v59, 2  ;;  %v1212_v20 = vsel %vm571_vm6, %v1210_v50, 0.0 }
 0x3b0   : > { %v1055_v8 = vadd.f32 %v1054_v62, %v1053_v59  ;;  %v1812_v62 = vpop.eup %1811 }
 0x3b1   : > { %v1814_v5 = vpop.eup %1813  ;;  %v1284_v6 = vmul.f32 %v1812_v62, %v1249_v55 }
 0x3b2   : > { %v1056_v19 = vrot.slane %v1055_v8, 1 }
 0x3b3   : > { %v1303_v26 = vadd.f32 %v1301_v44, %v1284_v6 }
 0x3b4   : > { %v1057_v29 = vadd.f32 %v1056_v19, %v1055_v8  ;;  %v1099_v30 = vpop.permute.xlu1 %1098 }
 0x3b5   : > { %v1102_v9 = vmul.f32 %v1099_v30, %v1087_v45  ;;  %v1229_v45 = vmul.f32 %v1810_v40, %v1194_v58  ;;  %v1816_v30 = vpop.eup %1815 }
 0x3b6   : > { %1058 = vst.msk [vmem:[#allocation7 + $0x1] sm:$0x1] %vm1003_vm5, %v1057_v29  ;;  %v1818_v33 = vpop.eup %1817 }
 0x3b7   : > { %v1104_v35 = vsel %vm571_vm6, %v1102_v9, 0.0  ;;  %v1248_v57 = vadd.f32 %v1246_v49, %v1229_v45 }
 0x3b8   : > { %v1105_v39 = vadd.f32 %v1104_v35, %v1103_v34  ;;  %v1338_v34 = vmul.f32 %v1818_v33, %v1303_v26  ;;  %v1354_v35 = vmul.f32 %v1760_v10, %v2191_v31 }
 0x3b9   : > { %v1283_v37 = vmul.f32 %v1814_v5, %v1248_v57 }
 0x3ba   : > { %v1106_v46 = vrot.slane %v1105_v39, 4  ;;  %v1357_v40 = vadd.f32 %v1355_v32, %v1338_v34 }
 0x3bb   : > { %v1302_v21 = vadd.f32 %v1300_v18, %v1283_v37  ;;  %v1670_v37 = vld [vmem:[%s2331_s12] sm:$0xff] }
 0x3bc   : > { %v1107_v51 = vadd.f32 %v1106_v46, %v1105_v39  ;;  %v1153_v52 = vpop.permute.xlu0 %1152  ;;  %v1202_v54 = vpop.permute.xlu1 %1201 }
 0x3bd   : > { %v1156_v53 = vmul.f32 %v1153_v52, %v1141_v23  ;;  %v1209_v59 = vmul.f32 %v1202_v54, %v1194_v58  ;;  %v1310_v19 = vpop.permute.xlu2 %1309  ;;  %v1337_v28 = vmul.f32 %v1816_v30, %v1302_v21 }
 0x3be   : > { %v1108_v14 = vrot.slane %v1107_v51, 2  ;;  %v1317_v54 = vmul.f32 %v1310_v19, %v1302_v21  ;;  %v1766_v21 = vld [vmem:[%s2330_s11] ss:$0 sm:$0xff] }
 0x3bf   : > { %v1158_v61 = vsel %vm571_vm6, %v1156_v53, 0.0  ;;  %v1211_v3 = vsel %vm571_vm6, %v1209_v59, 0.0  ;;  %v1356_v43 = vadd.f32 %v1354_v35, %v1337_v28  ;;  %v1673_v53 = vld [vmem:[%s2331_s12 + $0x18] sm:$0xff]  ;;  %v1388_v10 = vmul.f32 %v1766_v21, %v2100_v11 }
 0x3c0   : > { %v1109_v63 = vadd.f32 %v1108_v14, %v1107_v51  ;;  %v1159_v1 = vadd.f32 %v1158_v61, %v1157_v25  ;;  %v1213_v23 = vadd.f32 %v1212_v20, %v1211_v3  ;;  %1455 = vmatpush.bf16.msra.mxu3 %v1673_v53  ;;  %v1319_v25 = vsel %vm571_vm6, %v1317_v54, 0.0 }
 0x3c2   : > { %v1110_v7 = vrot.slane %v1109_v63, 1  ;;  %v1160_v8 = vrot.slane %v1159_v1, 4  ;;  %v1214_v12 = vrot.slane %v1213_v23, 4 }
 0x3c4   : > { %v1111_v13 = vadd.f32 %v1110_v7, %v1109_v63  ;;  %v1161_v15 = vadd.f32 %v1160_v8, %v1159_v1  ;;  %v1215_v22 = vadd.f32 %v1214_v12, %v1213_v23  ;;  %v1261_v24 = vpop.permute.xlu1 %1260  ;;  %v1671_v1 = vld [vmem:[%s2331_s12 + $0x8] sm:$0xff] }
 0x3c5   : > { %v1264_v39 = vmul.f32 %v1261_v24, %v1249_v55 }
 0x3c6   : > { %1112 = vst.msk [vmem:[#allocation7 + $0x2] sm:$0x1] %vm1003_vm5, %v1111_v13  ;;  %v1162_v29 = vrot.slane %v1161_v15, 2  ;;  %v1216_v9 = vrot.slane %v1215_v22, 2 }
 0x3c7   : > { %v1266_v48 = vsel %vm571_vm6, %v1264_v39, 0.0 }
 0x3c8   : > { %v1163_v58 = vadd.f32 %v1162_v29, %v1161_v15  ;;  %v1217_v27 = vadd.f32 %v1216_v9, %v1215_v22 }
 0x3ca   : > { %v1164_v36 = vrot.slane %v1163_v58, 1  ;;  %v1218_v38 = vrot.slane %v1217_v27, 1 }
 0x3cc   : > { %v1165_v41 = vadd.f32 %v1164_v36, %v1163_v58  ;;  %v1256_v42 = vpop.permute.xlu0 %1255  ;;  %v1369_v17 = vpop.permute.xlu2 %1368  ;;  %v1219_v46 = vadd.f32 %v1218_v38, %v1217_v27 }
 0x3cd   : > { %v1263_v45 = vmul.f32 %v1256_v42, %v1248_v57  ;;  %v1372_v16 = vmul.f32 %v1369_v17, %v1357_v40  ;;  %v1364_v0 = vpop.permute.xlu1 %1363  ;;  %v1672_v57 = vld [vmem:[%s2331_s12 + $0x10] sm:$0xff] }
 0x3ce   : > { %1166 = vst.msk [vmem:[#allocation7 + $0x3] sm:$0x1] %vm1003_vm5, %v1165_v41  ;;  %v1371_v47 = vmul.f32 %v1364_v0, %v1356_v43  ;;  %1456 = vmatpush.bf16.msra.mxu3 %v1672_v57 }
 0x3cf   : > { %1220 = vst.msk [vmem:[#allocation7 + $0x4] sm:$0x1] %vm1003_vm5, %v1219_v46  ;;  %v1265_v31 = vsel %vm571_vm6, %v1263_v45, 0.0  ;;  %v1374_v49 = vsel %vm571_vm6, %v1372_v16, 0.0 }
 0x3d0   : > { %v1267_v50 = vadd.f32 %v1266_v48, %v1265_v31  ;;  %v1373_v51 = vsel %vm571_vm6, %v1371_v47, 0.0 }
 0x3d1   : > { %v1375_v52 = vadd.f32 %v1374_v49, %v1373_v51 }
 0x3d2   : > { %v1268_v4 = vrot.slane %v1267_v50, 4  ;;  %1457 = vmatpush.bf16.msra.mxu3 %v1671_v1 }
 0x3d3   : > { %v1376_v55 = vrot.slane %v1375_v52, 4 }
 0x3d4   : > { %v1269_v56 = vadd.f32 %v1268_v4, %v1267_v50  ;;  %v1315_v14 = vpop.permute.xlu0 %1314 }
 0x3d5   : > { %v1377_v59 = vadd.f32 %v1376_v55, %v1375_v52  ;;  %v1318_v60 = vmul.f32 %v1315_v14, %v1303_v26 }
 0x3d6   : > { %v1270_v18 = vrot.slane %v1269_v56, 2  ;;  %1458 = vmatpush.bf16.msra.mxu3 %v1670_v37 }
 0x3d7   : > { %v1378_v61 = vrot.slane %v1377_v59, 2  ;;  %v1320_v62 = vsel %vm571_vm6, %v1318_v60, 0.0 }
 0x3d8   : > { %v1271_v20 = vadd.f32 %v1270_v18, %v1269_v56  ;;  %v1321_v63 = vadd.f32 %v1320_v62, %v1319_v25 }
 0x3d9   : > { %v1379_v3 = vadd.f32 %v1378_v61, %v1377_v59 }
 0x3da   : > { %v1272_v5 = vrot.slane %v1271_v20, 1  ;;  %v1322_v23 = vrot.slane %v1321_v63, 4 }
 0x3db   : > { %v1380_v6 = vrot.slane %v1379_v3, 1 }
 0x3dc   : > { %v1273_v7 = vadd.f32 %v1272_v5, %v1271_v20  ;;  %v1323_v8 = vadd.f32 %v1322_v23, %v1321_v63  ;;  %v1412_v26 = vpop.permute.xlu0 %1411 }
 0x3dd   : > { %v1381_v44 = vadd.f32 %v1380_v6, %v1379_v3 }
 0x3de   : > { %1274 = vst.msk [vmem:[#allocation7 + $0x5] sm:$0x1] %vm1003_vm5, %v1273_v7  ;;  %v1324_v12 = vrot.slane %v1323_v8, 2 }
 0x3df   : > { %1382 = vst.msk [vmem:[#allocation7 + $0x7] sm:$0x1] %vm1003_vm5, %v1381_v44 }
 0x3e0   : > { %v1325_v13 = vadd.f32 %v1324_v12, %v1323_v8 }
 0x3e2   : > { %v1326_v15 = vrot.slane %v1325_v13, 1 }
 0x3e4   : > { %v1327_v19 = vadd.f32 %v1326_v15, %v1325_v13 }
 0x3e6   : > { %1328 = vst.msk [vmem:[#allocation7 + $0x6] sm:$0x1] %vm1003_vm5, %v1327_v19 }
 0x3ed   : > { %v1383_v22 = vld [vmem:[#allocation7] sm:$0xff] }
 0x3ee   : > { %v1389_v24 = vadd.f32 %v1388_v10, %v1383_v22 }
 0x3f0   : > { %v1414_v29 = vmul.f32 %v1412_v26, %v1389_v24 }
 0x3f2   : > { %v1415_v30 = vpack.c.bf16 %v1414_v29, %v1414_v29 }
 0x3f4   : > { %1657 = vmatmul.msk.bf16.vlgmr.msra.gmra.mxu3 %vm571_vm6, %v1415_v30 }
 0x3f5   : > { %1846 = shalt.err (!%p1843_p3)
}
 0x3f6   : > { %1675 = dma.vmem_to_hbm [thread:$0]  (%p2032_p5), %s1498_s28, 128, %s1500_s18, %s1471_s20  }
 0x3f7   : > { %s1481_s26 = scalar_lea.hbm %s2332_s13, %s1660_s0  ;;  %s475_s27 = scalar_lea.vmem [#allocation8], %s1608_s1 }
 0x3f8   : > { %s1483_s4 = sshll.u32 %s475_s27, 4  ;;  %s1485_s17 = sshll.u32 %s1481_s26, 4  ;;  %s1484_s4 = int_to_ptr.vmem [resolvable:$true] %s1483_s4  ;;  %s1486_s17 = int_to_ptr.hbm [resolvable:$true] %s1485_s17 }
 0x3f9   : > { %s1466_s2 = scalar_lea.sflag [#allocation9], %s2267_s21  ;;  %s1861_s3 = sshra.s32 %s1486_s17, 4  ;;  %s1862_s3 = int_to_ptr.hbm [resolvable:$true] %s1861_s3 }
 0x3fa   : > { %s1863_s5 = scalar_lea.hbm %s1862_s3, 8  ;;  %s1867_s0 = scalar_lea.hbm %s2332_s13, 16 }
 0x3fb   : > { %p1864_p4 = scmp.ne.s32.totalorder %s1862_s3, %s1863_s5  ;;  %p1868_p9 = scmp.lt.s32.totalorder %s1862_s3, %s2332_s13 }
 0x3fc   : > { %p1869_p10 = scmp.lt.s32.totalorder %s1867_s0, %s1863_s5 }
 0x3fd   : > { %p1865_p7 = pnand %p1864_p4, %p2032_p5 }
 0x3fe   : > { %p1870_p11 = por %p1869_p10, %p1868_p9 }
 0x3ff   : > { %p1866_p8 = pneg %p1865_p7 }
 0x401   : > { %p1871_p12 = pnand %p1870_p11, %p1866_p8 }
 0x477   : > { %v1460_v2 = vpop.f32.mrf.mxu3 }
 0x478   : > { %1464 = vst.msk [vmem:[%s475_s27] sm:$0xff] %vm495_vm0, %v1460_v2 }
 0x479   : > { %1874 = shalt.err (!%p1871_p12)
}
 0x47a   : > { %1674 = dma.vmem_to_hbm [thread:$0]  (%p2032_p5), %s1484_s4, 128, %s1486_s17, %s1466_s2  }
 0x47f   : > { %v1462_v11 = vpop.f32.mrf.mxu3 }
 0x480 PF: > { %p1685_p13 = scmp.ge.s32.totalorder %s1913_s16, 2  ;;  %s1511_s21 = sand.u32 1, %s1901_s29  }
 0x481   : > { %s1512_s18 = scalar_lea.sflag [#allocation9], %s1511_s21 }
 0x482   : > { %p1679_p0 = pnand %p1685_p13, %p2036_p6 }
 0x484   : > { %p1680_p1 = pneg %p1679_p0 }
 0x486   : > { %1892 = dma.done.wait (%p1680_p1), %s1512_s18, 128  }
 0x487   : > { %1894 = vsyncadd (%p1680_p1), %s1512_s18, 4294967168  ;;  %s1522_s20 = scalar_lea.sflag [#allocation11], %s1511_s21 }
 0x488   : > { %1896 = dma.done.wait (%p1680_p1), %s1522_s20, 128  }
 0x489   : > { %1898 = vsyncadd (%p1680_p1), %s1522_s20, 4294967168  ;;  %s2353_s23 = sld [smem:[#allocation14_spill]]  ;;  %p28_p5 = scmp.ge.s32.totalorder %s2019_s19, 4  }
 0x48a   : > { %s2354_s29 = smov %s1905_s30  ;;  %s2355_s30 = smov %s1909_s15 }
 0x48b   : > { %s2357_s16 = smov %s2019_s19  ;;  %30 = sbr.rel (!%p28_p5) target bundleno = 14 (0xe), region = 141 }
 0x48f   : > { %s2356_s15 = smov %s2353_s23 }
 0x490   :  { %1528 = vsyncpa [#allocation9], 1 }
 0x491   :  { %1530 = vsyncpa [#allocation9 + $0x1], 1 }
 0x492   :  { %1531 = vsyncpa [#allocation11], 1 }
 0x493   :  { %1533 = vsyncpa [#allocation11 + $0x1], 1 }

</bundles_post_ra>
